<compile_context>
chip_gen: v7x
topology: tpu7x:2x2x1
jax: 0.10.0
libtpu: 0.0.40
codegen_flags: <defaults>
</compile_context>

<pallas_src>
import jax
import jax.numpy as jnp
from jax.experimental import pallas as pl
from jax.experimental.pallas import tpu as pltpu


def _oab_kernel(
    x_ref, proxy_ref, mask_ref,
    wp1_ref, bp1_ref, wp2_ref, bp2_ref,      # f_pixel  (BN scale folded into w)
    wo1_ref, bo1_ref, wo2_ref, bo2_ref,      # f_object (BN + Kc^-0.5 folded in)
    wd_ref, bd_ref,                          # f_down
    wu_ref, bu_ref,                          # f_up
    out_ref,
    k_sc, v_sc,                              # per-image cached key / value
):
    cdt = x_ref.dtype       # MXU operand dtype (no eager f32 upcast)

    def proj(w_ref, b_ref, inp):
        # 1x1 conv (channels-first), BN scale pre-folded into w: relu(W @ x + b)
        y = jnp.dot(w_ref[...], inp, preferred_element_type=jnp.float32)
        return jnp.maximum(y + b_ref[...], 0.0)

    # key = f_object(proxy) * Kc^-0.5, value = f_down(proxy): (Kc, Pp_pad).
    # Computed once per image (when the spatial-tile index is 0) and cached in
    # VMEM scratch; all later spatial tiles of this image reuse the cache.
    @pl.when(pl.program_id(1) == 0)
    def _():
        pxy = proxy_ref[0]                    # (C, Pp_pad) padded object regions
        k = proj(wo1_ref, bo1_ref, pxy)
        k = proj(wo2_ref, bo2_ref, k.astype(cdt))
        v = proj(wd_ref, bd_ref, pxy)
        k_sc[...] = k.astype(cdt)
        v_sc[...] = v.astype(cdt)

    # query = f_pixel(x tile): (Kc, TP)
    x = x_ref[0]                              # (C, TP) channels-first spatial tile
    q = proj(wp1_ref, bp1_ref, x)
    q = proj(wp2_ref, bp2_ref, q.astype(cdt))

    # sim = softmax over object regions of q^T k  (scale already in k).
    q_t = jnp.transpose(q).astype(cdt)                    # (TP, Kc): small XLU transpose
    sim = jnp.dot(q_t, k_sc[...],
                  preferred_element_type=jnp.float32)     # (TP, Pp_pad)
    sim = sim + mask_ref[...]                             # padded columns get -1e30
    m = jnp.max(sim, axis=-1, keepdims=True)
    e = jnp.exp(sim - m)
    p_attn = e * pl.reciprocal(jnp.sum(e, axis=-1, keepdims=True), approx=True)

    # context^T = v @ p_attn^T: contraction over the padded object axis
    # (NT matmul, no transpose); padded columns carry zero attention weight.
    ctx = jax.lax.dot_general(
        v_sc[...], p_attn.astype(cdt),
        dimension_numbers=(((1,), (1,)), ((), ())),
        preferred_element_type=jnp.float32)               # (Kc, TP)

    # out = f_up(context): (C, TP) -> lane-dense store along the spatial axis
    out = proj(wu_ref, bu_ref, ctx.astype(cdt))
    out_ref[0] = out.astype(out_ref.dtype)


def _round_up(x, m):
    return (x + m - 1) // m * m


def _pick_spatial_tile(P):
    for tp in (1024, 512, 256, 128):
        if P % tp == 0:
            return tp
    # TODO(synk): spatial sizes not divisible by 128 fall back to one tile per image.
    return P


def object_attention_block(x_nchw, proxy_nchw, params, key_channels, *, tp=None):
    """x_nchw: (N,C,H,W), proxy_nchw: (N,C,Hp,Wp). Returns (N,C,H,W). scale=1 only.

    Assumes BatchNorm running stats are folded into per-channel (scale, bias)
    in `params` (inference semantics).
    """
    N, C, H, W = x_nchw.shape
    Np, Cp, Hp, Wp = proxy_nchw.shape
    assert Np == N and Cp == C
    P, Pp = H * W, Hp * Wp
    Kc = key_channels
    compute_dtype = x_nchw.dtype

    # NCHW -> channels-first flattened views (free reshapes, no HBM transpose).
    x = x_nchw.reshape(N, C, P)
    pxy = proxy_nchw.reshape(N, C, Pp)

    # Pad the object axis to a lane-dense multiple of 128; mask pads in softmax.
    Pp_pad = max(128, _round_up(Pp, 128))
    if Pp_pad != Pp:
        pxy = jnp.pad(pxy, ((0, 0), (0, 0), (0, Pp_pad - Pp)))
    mask = jnp.where(jnp.arange(Pp_pad) < Pp, 0.0, -1e30)
    mask = mask.astype(jnp.float32).reshape(1, Pp_pad)

    # Spatial tile along P (multiple of 128, or all of P).
    if tp is None:
        tp = _pick_spatial_tile(P)
    assert P % tp == 0 and (tp % 128 == 0 or tp == P), "bad spatial tile"
    n_tiles = P // tp

    # Fold BN scale (and Kc^-0.5 for the key path) into the transposed
    # (channels-first) weights at parameter-prep time; keep biases f32.
    kc_scale = float(Kc) ** -0.5

    def w_t(wn, sn, extra=1.0):
        return (jnp.transpose(params[wn] * params[sn]) * extra).astype(compute_dtype)

    def b_col(bn, extra=1.0):
        return (params[bn].reshape(-1, 1) * extra).astype(jnp.float32)

    weights = [
        w_t("wp1", "sp1"), b_col("bp1"), w_t("wp2", "sp2"), b_col("bp2"),
        w_t("wo1", "so1"), b_col("bo1"),
        w_t("wo2", "so2", kc_scale), b_col("bo2", kc_scale),
        w_t("wd", "sd"), b_col("bd"),
        w_t("wu", "su"), b_col("bu"),
    ]

    def full_spec(shape):
        nd = len(shape)
        return pl.BlockSpec(shape, lambda b, t, _nd=nd: (0,) * _nd)

    in_specs = [
        pl.BlockSpec((1, C, tp), lambda b, t: (b, 0, t)),        # x spatial tile
        pl.BlockSpec((1, C, Pp_pad), lambda b, t: (b, 0, 0)),    # whole proxy (per batch)
        pl.BlockSpec((1, Pp_pad), lambda b, t: (0, 0)),          # softmax pad mask
    ] + [full_spec(w.shape) for w in weights]

    # Rough VMEM budget: double-buffered x/out tiles + proxy + weights + cached
    # k/v scratch + f32 intermediates. Cap the scoped limit so it also fits
    # v7x's 64 MiB physical VMEM.
    isz = jnp.dtype(compute_dtype).itemsize
    est = 2 * C * tp * isz                                   # x tiles (double buffered)
    est += 2 * C * tp * isz                                  # out tiles
    est += 2 * (C * Pp_pad * isz + Pp_pad * 4)               # proxy + mask
    est += 2 * sum(int(w.size) * jnp.dtype(w.dtype).itemsize for w in weights)
    est += 2 * Kc * Pp_pad * isz                             # cached key / value
    est += 4 * (2 * Kc * tp + 2 * Kc * Pp_pad + 2 * tp * Pp_pad + C * tp)
    vmem_limit = int(min(64 * 1024 * 1024, max(32 * 1024 * 1024, 2 * est)))

    out = pl.pallas_call(
        _oab_kernel,
        out_shape=jax.ShapeDtypeStruct((N, C, P), x_nchw.dtype),
        grid_spec=pltpu.PrefetchScalarGridSpec(
            num_scalar_prefetch=0,
            grid=(N, n_tiles),
            in_specs=in_specs,
            out_specs=pl.BlockSpec((1, C, tp), lambda b, t: (b, 0, t)),
            scratch_shapes=[
                pltpu.VMEM((Kc, Pp_pad), compute_dtype),     # cached key (scaled)
                pltpu.VMEM((Kc, Pp_pad), compute_dtype),     # cached value
            ]),
        compiler_params=pltpu.CompilerParams(
            # Spatial-tile axis is "arbitrary": tiles of one image must run in
            # order on one core so the t==0 key/value cache init is seen first.
            dimension_semantics=("parallel", "arbitrary"),
            vmem_limit_bytes=vmem_limit),
    )(x, pxy, mask, *weights)

    return out.reshape(N, C, H, W)


def init_params(key, in_channels, key_channels):
    """Deterministic synthetic parameters. BN running stats folded into scale/bias."""
    C, Kc = in_channels, key_channels
    ks = jax.random.split(key, 12)

    def w(k, shp):
        return jax.random.normal(k, shp, jnp.float32) * 0.1

    def sb(k, n):
        k1, k2 = jax.random.split(k)
        s = 1.0 + 0.1 * jax.random.normal(k1, (1, n), jnp.float32)
        b = 0.05 * jax.random.normal(k2, (1, n), jnp.float32)
        return s, b

    sp1, bp1 = sb(ks[1], Kc); sp2, bp2 = sb(ks[3], Kc)
    so1, bo1 = sb(ks[5], Kc); so2, bo2 = sb(ks[7], Kc)
    sd, bd = sb(ks[9], Kc); su, bu = sb(ks[11], C)
    return {
        "wp1": w(ks[0], (C, Kc)), "sp1": sp1, "bp1": bp1,
        "wp2": w(ks[2], (Kc, Kc)), "sp2": sp2, "bp2": bp2,
        "wo1": w(ks[4], (C, Kc)), "so1": so1, "bo1": bo1,
        "wo2": w(ks[6], (Kc, Kc)), "so2": so2, "bo2": bo2,
        "wd": w(ks[8], (C, Kc)), "sd": sd, "bd": bd,
        "wu": w(ks[10], (Kc, C)), "su": su, "bu": bu,
    }


def _reference(x_nchw, proxy_nchw, p, Kc):
    """Pure-JAX reference mirroring the PyTorch forward (scale=1, folded BN)."""
    N, C, H, W = x_nchw.shape
    _, _, Hp, Wp = proxy_nchw.shape
    x = jnp.transpose(x_nchw.reshape(N, C, H * W), (0, 2, 1))
    pr = jnp.transpose(proxy_nchw.reshape(N, C, Hp * Wp), (0, 2, 1))
    bnr = lambda y, s, b: jnp.maximum(y * s + b, 0.0)
    q = bnr(bnr(x @ p["wp1"], p["sp1"], p["bp1"]) @ p["wp2"], p["sp2"], p["bp2"])
    k = bnr(bnr(pr @ p["wo1"], p["so1"], p["bo1"]) @ p["wo2"], p["so2"], p["bo2"])
    v = bnr(pr @ p["wd"], p["sd"], p["bd"])
    sim = jnp.einsum("npk,nqk->npq", q, k) * (Kc ** -0.5)
    sim = jax.nn.softmax(sim, axis=-1)
    ctx = jnp.einsum("npq,nqk->npk", sim, v)
    out = bnr(ctx @ p["wu"], p["su"], p["bu"])
    return jnp.transpose(out, (0, 2, 1)).reshape(N, C, H, W)


if __name__ == "__main__":
    N, C, Kc = 2, 32, 16
    H = W = 16
    K_proxy = 8  # number of object-region "pixels" in proxy (Hp=8, Wp=1)

    key = jax.random.PRNGKey(0)
    kx, kp, kw = jax.random.split(key, 3)
    x = jax.random.normal(kx, (N, C, H, W), jnp.float32)
    proxy = jax.random.normal(kp, (N, C, K_proxy, 1), jnp.float32)
    params = init_params(kw, C, Kc)

    # tp=128 -> grid=(2, 2): exercises spatial tiling and the per-image
    # key/value cache reuse at t > 0.
    out = object_attention_block(x, proxy, params, Kc, tp=128)
    out = jax.block_until_ready(out)

    ref = _reference(x, proxy, params, Kc)
    assert out.shape == (N, C, H, W)
    max_err = float(jnp.max(jnp.abs(out - ref)))
    assert jnp.allclose(out, ref, atol=2e-3, rtol=2e-3), (
        f"mismatch vs reference (max abs err {max_err})")

    print("KERNEL_OK")
</pallas_src>

<mosaic_0001>
module attributes {stable_mosaic.version = 11 : i64} {
  func.func @_oab_kernel(%arg0: i32, %arg1: i32, %arg2: memref<1x32x128xf32, #tpu.memory_space<vmem>>, %arg3: memref<1x32x128xf32, #tpu.memory_space<vmem>>, %arg4: memref<1x128xf32, #tpu.memory_space<vmem>>, %arg5: memref<16x32xf32, #tpu.memory_space<vmem>>, %arg6: memref<16x1xf32, #tpu.memory_space<vmem>>, %arg7: memref<16x16xf32, #tpu.memory_space<vmem>>, %arg8: memref<16x1xf32, #tpu.memory_space<vmem>>, %arg9: memref<16x32xf32, #tpu.memory_space<vmem>>, %arg10: memref<16x1xf32, #tpu.memory_space<vmem>>, %arg11: memref<16x16xf32, #tpu.memory_space<vmem>>, %arg12: memref<16x1xf32, #tpu.memory_space<vmem>>, %arg13: memref<16x32xf32, #tpu.memory_space<vmem>>, %arg14: memref<16x1xf32, #tpu.memory_space<vmem>>, %arg15: memref<32x16xf32, #tpu.memory_space<vmem>>, %arg16: memref<32x1xf32, #tpu.memory_space<vmem>>, %arg17: memref<1x32x128xf32, #tpu.memory_space<vmem>>, %arg18: memref<16x128xf32, #tpu.memory_space<vmem>>, %arg19: memref<16x128xf32, #tpu.memory_space<vmem>>) attributes {dimension_semantics = [#tpu.dimension_semantics<parallel>, #tpu.dimension_semantics<arbitrary>], iteration_bounds = array<i64: 2, 2>, scalar_prefetch = 0 : i64, scratch_operands = 2 : i64, tpu.core_type = #tpu.core_type<tc>, window_params = [{transform_indices = @transform_0, window_bounds = array<i64: 1, 32, 128>}, {transform_indices = @transform_1, window_bounds = array<i64: 1, 32, 128>}, {pipeline_mode = #tpu.pipeline_mode<synchronous>, transform_indices = @transform_2, window_bounds = array<i64: 1, 128>}, {pipeline_mode = #tpu.pipeline_mode<synchronous>, transform_indices = @transform_3, window_bounds = array<i64: 16, 32>}, {pipeline_mode = #tpu.pipeline_mode<synchronous>, transform_indices = @transform_4, window_bounds = array<i64: 16, 1>}, {pipeline_mode = #tpu.pipeline_mode<synchronous>, transform_indices = @transform_5, window_bounds = array<i64: 16, 16>}, {pipeline_mode = #tpu.pipeline_mode<synchronous>, transform_indices = @transform_6, window_bounds = array<i64: 16, 1>}, {pipeline_mode = #tpu.pipeline_mode<synchronous>, transform_indices = @transform_7, window_bounds = array<i64: 16, 32>}, {pipeline_mode = #tpu.pipeline_mode<synchronous>, transform_indices = @transform_8, window_bounds = array<i64: 16, 1>}, {pipeline_mode = #tpu.pipeline_mode<synchronous>, transform_indices = @transform_9, window_bounds = array<i64: 16, 16>}, {pipeline_mode = #tpu.pipeline_mode<synchronous>, transform_indices = @transform_10, window_bounds = array<i64: 16, 1>}, {pipeline_mode = #tpu.pipeline_mode<synchronous>, transform_indices = @transform_11, window_bounds = array<i64: 16, 32>}, {pipeline_mode = #tpu.pipeline_mode<synchronous>, transform_indices = @transform_12, window_bounds = array<i64: 16, 1>}, {pipeline_mode = #tpu.pipeline_mode<synchronous>, transform_indices = @transform_13, window_bounds = array<i64: 32, 16>}, {pipeline_mode = #tpu.pipeline_mode<synchronous>, transform_indices = @transform_14, window_bounds = array<i64: 32, 1>}, {transform_indices = @transform_15, window_bounds = array<i64: 1, 32, 128>}]} {
    %c0_i32 = arith.constant 0 : i32
    %0 = arith.cmpi eq, %arg1, %c0_i32 : i32
    %1 = arith.extui %0 : i1 to i32
    %c0_i32_0 = arith.constant 0 : i32
    %2 = arith.cmpi ne, %1, %c0_i32_0 : i32
    scf.if %2 {
      %c0_33 = arith.constant 0 : index
      %c0_34 = arith.constant 0 : index
      %c0_35 = arith.constant 0 : index
      %47 = vector.load %arg3[%c0_33, %c0_34, %c0_35] : memref<1x32x128xf32, #tpu.memory_space<vmem>>, vector<1x32x128xf32>
      %48 = vector.shape_cast %47 : vector<1x32x128xf32> to vector<32x128xf32>
      %c0_36 = arith.constant 0 : index
      %c0_37 = arith.constant 0 : index
      %49 = vector.load %arg9[%c0_36, %c0_37] : memref<16x32xf32, #tpu.memory_space<vmem>>, vector<16x32xf32>
      %cst_38 = arith.constant dense<0.000000e+00> : vector<16x128xf32>
      %50 = tpu.matmul %49, %48, %cst_38 {dimension_numbers = #tpu.dot_dimension_numbers<[1], [0], [0], [1], [0, 0, 1, 1], [], []>} : vector<16x32xf32>, vector<32x128xf32>, vector<16x128xf32> -> vector<16x128xf32>
      %c0_39 = arith.constant 0 : index
      %c0_40 = arith.constant 0 : index
      %51 = vector.load %arg10[%c0_39, %c0_40] : memref<16x1xf32, #tpu.memory_space<vmem>>, vector<16x1xf32>
      %52 = vector.broadcast %51 : vector<16x1xf32> to vector<16x128xf32>
      %53 = arith.addf %50, %52 : vector<16x128xf32>
      %cst_41 = arith.constant 0.000000e+00 : f32
      %54 = vector.broadcast %cst_41 : f32 to vector<16x128xf32>
      %55 = arith.maximumf %53, %54 : vector<16x128xf32>
      %c0_42 = arith.constant 0 : index
      %c0_43 = arith.constant 0 : index
      %56 = vector.load %arg11[%c0_42, %c0_43] : memref<16x16xf32, #tpu.memory_space<vmem>>, vector<16x16xf32>
      %cst_44 = arith.constant dense<0.000000e+00> : vector<16x128xf32>
      %57 = tpu.matmul %56, %55, %cst_44 {dimension_numbers = #tpu.dot_dimension_numbers<[1], [0], [0], [1], [0, 0, 1, 1], [], []>} : vector<16x16xf32>, vector<16x128xf32>, vector<16x128xf32> -> vector<16x128xf32>
      %c0_45 = arith.constant 0 : index
      %c0_46 = arith.constant 0 : index
      %58 = vector.load %arg12[%c0_45, %c0_46] : memref<16x1xf32, #tpu.memory_space<vmem>>, vector<16x1xf32>
      %59 = vector.broadcast %58 : vector<16x1xf32> to vector<16x128xf32>
      %60 = arith.addf %57, %59 : vector<16x128xf32>
      %cst_47 = arith.constant 0.000000e+00 : f32
      %61 = vector.broadcast %cst_47 : f32 to vector<16x128xf32>
      %62 = arith.maximumf %60, %61 : vector<16x128xf32>
      %c0_48 = arith.constant 0 : index
      %c0_49 = arith.constant 0 : index
      %63 = vector.load %arg13[%c0_48, %c0_49] : memref<16x32xf32, #tpu.memory_space<vmem>>, vector<16x32xf32>
      %cst_50 = arith.constant dense<0.000000e+00> : vector<16x128xf32>
      %64 = tpu.matmul %63, %48, %cst_50 {dimension_numbers = #tpu.dot_dimension_numbers<[1], [0], [0], [1], [0, 0, 1, 1], [], []>} : vector<16x32xf32>, vector<32x128xf32>, vector<16x128xf32> -> vector<16x128xf32>
      %c0_51 = arith.constant 0 : index
      %c0_52 = arith.constant 0 : index
      %65 = vector.load %arg14[%c0_51, %c0_52] : memref<16x1xf32, #tpu.memory_space<vmem>>, vector<16x1xf32>
      %66 = vector.broadcast %65 : vector<16x1xf32> to vector<16x128xf32>
      %67 = arith.addf %64, %66 : vector<16x128xf32>
      %cst_53 = arith.constant 0.000000e+00 : f32
      %68 = vector.broadcast %cst_53 : f32 to vector<16x128xf32>
      %69 = arith.maximumf %67, %68 : vector<16x128xf32>
      %c0_54 = arith.constant 0 : index
      %c0_55 = arith.constant 0 : index
      %70 = vector.load %arg18[%c0_54, %c0_55] : memref<16x128xf32, #tpu.memory_space<vmem>>, vector<16x128xf32>
      tpu.vector_store %arg18[%c0_54, %c0_55], %62 {strides = array<i32>} : memref<16x128xf32, #tpu.memory_space<vmem>>, vector<16x128xf32>,
      %c0_56 = arith.constant 0 : index
      %c0_57 = arith.constant 0 : index
      %71 = vector.load %arg19[%c0_56, %c0_57] : memref<16x128xf32, #tpu.memory_space<vmem>>, vector<16x128xf32>
      tpu.vector_store %arg19[%c0_56, %c0_57], %69 {strides = array<i32>} : memref<16x128xf32, #tpu.memory_space<vmem>>, vector<16x128xf32>,
    } else {
    }
    %c0 = arith.constant 0 : index
    %c0_1 = arith.constant 0 : index
    %c0_2 = arith.constant 0 : index
    %3 = vector.load %arg2[%c0, %c0_1, %c0_2] : memref<1x32x128xf32, #tpu.memory_space<vmem>>, vector<1x32x128xf32>
    %4 = vector.shape_cast %3 : vector<1x32x128xf32> to vector<32x128xf32>
    %c0_3 = arith.constant 0 : index
    %c0_4 = arith.constant 0 : index
    %5 = vector.load %arg5[%c0_3, %c0_4] : memref<16x32xf32, #tpu.memory_space<vmem>>, vector<16x32xf32>
    %cst = arith.constant dense<0.000000e+00> : vector<16x128xf32>
    %6 = tpu.matmul %5, %4, %cst {dimension_numbers = #tpu.dot_dimension_numbers<[1], [0], [0], [1], [0, 0, 1, 1], [], []>} : vector<16x32xf32>, vector<32x128xf32>, vector<16x128xf32> -> vector<16x128xf32>
    %c0_5 = arith.constant 0 : index
    %c0_6 = arith.constant 0 : index
    %7 = vector.load %arg6[%c0_5, %c0_6] : memref<16x1xf32, #tpu.memory_space<vmem>>, vector<16x1xf32>
    %8 = vector.broadcast %7 : vector<16x1xf32> to vector<16x128xf32>
    %9 = arith.addf %6, %8 : vector<16x128xf32>
    %cst_7 = arith.constant 0.000000e+00 : f32
    %10 = vector.broadcast %cst_7 : f32 to vector<16x128xf32>
    %11 = arith.maximumf %9, %10 : vector<16x128xf32>
    %c0_8 = arith.constant 0 : index
    %c0_9 = arith.constant 0 : index
    %12 = vector.load %arg7[%c0_8, %c0_9] : memref<16x16xf32, #tpu.memory_space<vmem>>, vector<16x16xf32>
    %cst_10 = arith.constant dense<0.000000e+00> : vector<16x128xf32>
    %13 = tpu.matmul %12, %11, %cst_10 {dimension_numbers = #tpu.dot_dimension_numbers<[1], [0], [0], [1], [0, 0, 1, 1], [], []>} : vector<16x16xf32>, vector<16x128xf32>, vector<16x128xf32> -> vector<16x128xf32>
    %c0_11 = arith.constant 0 : index
    %c0_12 = arith.constant 0 : index
    %14 = vector.load %arg8[%c0_11, %c0_12] : memref<16x1xf32, #tpu.memory_space<vmem>>, vector<16x1xf32>
    %15 = vector.broadcast %14 : vector<16x1xf32> to vector<16x128xf32>
    %16 = arith.addf %13, %15 : vector<16x128xf32>
    %cst_13 = arith.constant 0.000000e+00 : f32
    %17 = vector.broadcast %cst_13 : f32 to vector<16x128xf32>
    %18 = arith.maximumf %16, %17 : vector<16x128xf32>
    %19 = tpu.transpose %18, [1, 0] : vector<16x128xf32> -> vector<128x16xf32>
    %c0_14 = arith.constant 0 : index
    %c0_15 = arith.constant 0 : index
    %20 = vector.load %arg18[%c0_14, %c0_15] : memref<16x128xf32, #tpu.memory_space<vmem>>, vector<16x128xf32>
    %cst_16 = arith.constant dense<0.000000e+00> : vector<128x128xf32>
    %21 = tpu.matmul %19, %20, %cst_16 {dimension_numbers = #tpu.dot_dimension_numbers<[1], [0], [0], [1], [0, 0, 1, 1], [], []>} : vector<128x16xf32>, vector<16x128xf32>, vector<128x128xf32> -> vector<128x128xf32>
    %c0_17 = arith.constant 0 : index
    %c0_18 = arith.constant 0 : index
    %22 = vector.load %arg4[%c0_17, %c0_18] : memref<1x128xf32, #tpu.memory_space<vmem>>, vector<1x128xf32>
    %23 = vector.broadcast %22 : vector<1x128xf32> to vector<128x128xf32>
    %24 = arith.addf %21, %23 : vector<128x128xf32>
    %cst_19 = arith.constant dense<0xFF800000> : vector<128xf32>
    %25 = vector.multi_reduction <maximumf>, %24, %cst_19 [1] : vector<128x128xf32> to vector<128xf32>
    %26 = vector.shape_cast %25 : vector<128xf32> to vector<128x1xf32>
    %27 = vector.broadcast %26 : vector<128x1xf32> to vector<128x128xf32>
    %28 = arith.subf %24, %27 : vector<128x128xf32>
    %29 = math.exp %28 : vector<128x128xf32>
    %cst_20 = arith.constant dense<0.000000e+00> : vector<128xf32>
    %30 = vector.multi_reduction <add>, %29, %cst_20 [1] : vector<128x128xf32> to vector<128xf32>
    %31 = vector.shape_cast %30 : vector<128xf32> to vector<128x1xf32>
    %32 = tpu.reciprocal %31 {approx = true} : vector<128x1xf32> -> vector<128x1xf32>
    %33 = vector.broadcast %32 : vector<128x1xf32> to vector<128x128xf32>
    %34 = arith.mulf %29, %33 : vector<128x128xf32>
    %c0_21 = arith.constant 0 : index
    %c0_22 = arith.constant 0 : index
    %35 = vector.load %arg19[%c0_21, %c0_22] : memref<16x128xf32, #tpu.memory_space<vmem>>, vector<16x128xf32>
    %cst_23 = arith.constant dense<0.000000e+00> : vector<16x128xf32>
    %36 = tpu.matmul %35, %34, %cst_23 {dimension_numbers = #tpu.dot_dimension_numbers<[1], [1], [0], [0], [0, 0, 1, 0], [], []>} : vector<16x128xf32>, vector<128x128xf32>, vector<16x128xf32> -> vector<16x128xf32>
    %c0_24 = arith.constant 0 : index
    %c0_25 = arith.constant 0 : index
    %37 = vector.load %arg15[%c0_24, %c0_25] : memref<32x16xf32, #tpu.memory_space<vmem>>, vector<32x16xf32>
    %cst_26 = arith.constant dense<0.000000e+00> : vector<32x128xf32>
    %38 = tpu.matmul %37, %36, %cst_26 {dimension_numbers = #tpu.dot_dimension_numbers<[1], [0], [0], [1], [0, 0, 1, 1], [], []>} : vector<32x16xf32>, vector<16x128xf32>, vector<32x128xf32> -> vector<32x128xf32>
    %c0_27 = arith.constant 0 : index
    %c0_28 = arith.constant 0 : index
    %39 = vector.load %arg16[%c0_27, %c0_28] : memref<32x1xf32, #tpu.memory_space<vmem>>, vector<32x1xf32>
    %40 = vector.broadcast %39 : vector<32x1xf32> to vector<32x128xf32>
    %41 = arith.addf %38, %40 : vector<32x128xf32>
    %cst_29 = arith.constant 0.000000e+00 : f32
    %42 = vector.broadcast %cst_29 : f32 to vector<32x128xf32>
    %43 = arith.maximumf %41, %42 : vector<32x128xf32>
    %c0_30 = arith.constant 0 : index
    %c0_31 = arith.constant 0 : index
    %c0_32 = arith.constant 0 : index
    %44 = vector.load %arg17[%c0_30, %c0_31, %c0_32] : memref<1x32x128xf32, #tpu.memory_space<vmem>>, vector<1x32x128xf32>
    %45 = vector.shape_cast %44 : vector<1x32x128xf32> to vector<32x128xf32>
    %46 = vector.shape_cast %43 : vector<32x128xf32> to vector<1x32x128xf32>
    tpu.vector_store %arg17[%c0_30, %c0_31, %c0_32], %46 {strides = array<i32>} : memref<1x32x128xf32, #tpu.memory_space<vmem>>, vector<1x32x128xf32>,
    return
  }
  func.func @transform_0(%arg0: i32, %arg1: i32) -> (i32, i32, i32) {
    %c0_i32 = arith.constant 0 : i32
    %c0_i32_0 = arith.constant 0 : i32
    return %arg0, %c0_i32, %arg1 : i32, i32, i32
  }
  func.func @transform_1(%arg0: i32, %arg1: i32) -> (i32, i32, i32) {
    %c0_i32 = arith.constant 0 : i32
    %c0_i32_0 = arith.constant 0 : i32
    %c0_i32_1 = arith.constant 0 : i32
    return %arg0, %c0_i32, %c0_i32_0 : i32, i32, i32
  }
  func.func @transform_2(%arg0: i32, %arg1: i32) -> (i32, i32) {
    %c0_i32 = arith.constant 0 : i32
    %c0_i32_0 = arith.constant 0 : i32
    %c0_i32_1 = arith.constant 0 : i32
    return %c0_i32, %c0_i32_0 : i32, i32
  }
  func.func @transform_3(%arg0: i32, %arg1: i32) -> (i32, i32) {
    %c0_i32 = arith.constant 0 : i32
    %c0_i32_0 = arith.constant 0 : i32
    %c0_i32_1 = arith.constant 0 : i32
    return %c0_i32, %c0_i32_0 : i32, i32
  }
  func.func @transform_4(%arg0: i32, %arg1: i32) -> (i32, i32) {
    %c0_i32 = arith.constant 0 : i32
    %c0_i32_0 = arith.constant 0 : i32
    %c0_i32_1 = arith.constant 0 : i32
    return %c0_i32, %c0_i32_0 : i32, i32
  }
  func.func @transform_5(%arg0: i32, %arg1: i32) -> (i32, i32) {
    %c0_i32 = arith.constant 0 : i32
    %c0_i32_0 = arith.constant 0 : i32
    %c0_i32_1 = arith.constant 0 : i32
    return %c0_i32, %c0_i32_0 : i32, i32
  }
  func.func @transform_6(%arg0: i32, %arg1: i32) -> (i32, i32) {
    %c0_i32 = arith.constant 0 : i32
    %c0_i32_0 = arith.constant 0 : i32
    %c0_i32_1 = arith.constant 0 : i32
    return %c0_i32, %c0_i32_0 : i32, i32
  }
  func.func @transform_7(%arg0: i32, %arg1: i32) -> (i32, i32) {
    %c0_i32 = arith.constant 0 : i32
    %c0_i32_0 = arith.constant 0 : i32
    %c0_i32_1 = arith.constant 0 : i32
    return %c0_i32, %c0_i32_0 : i32, i32
  }
  func.func @transform_8(%arg0: i32, %arg1: i32) -> (i32, i32) {
    %c0_i32 = arith.constant 0 : i32
    %c0_i32_0 = arith.constant 0 : i32
    %c0_i32_1 = arith.constant 0 : i32
    return %c0_i32, %c0_i32_0 : i32, i32
  }
  func.func @transform_9(%arg0: i32, %arg1: i32) -> (i32, i32) {
    %c0_i32 = arith.constant 0 : i32
    %c0_i32_0 = arith.constant 0 : i32
    %c0_i32_1 = arith.constant 0 : i32
    return %c0_i32, %c0_i32_0 : i32, i32
  }
  func.func @transform_10(%arg0: i32, %arg1: i32) -> (i32, i32) {
    %c0_i32 = arith.constant 0 : i32
    %c0_i32_0 = arith.constant 0 : i32
    %c0_i32_1 = arith.constant 0 : i32
    return %c0_i32, %c0_i32_0 : i32, i32
  }
  func.func @transform_11(%arg0: i32, %arg1: i32) -> (i32, i32) {
    %c0_i32 = arith.constant 0 : i32
    %c0_i32_0 = arith.constant 0 : i32
    %c0_i32_1 = arith.constant 0 : i32
    return %c0_i32, %c0_i32_0 : i32, i32
  }
  func.func @transform_12(%arg0: i32, %arg1: i32) -> (i32, i32) {
    %c0_i32 = arith.constant 0 : i32
    %c0_i32_0 = arith.constant 0 : i32
    %c0_i32_1 = arith.constant 0 : i32
    return %c0_i32, %c0_i32_0 : i32, i32
  }
  func.func @transform_13(%arg0: i32, %arg1: i32) -> (i32, i32) {
    %c0_i32 = arith.constant 0 : i32
    %c0_i32_0 = arith.constant 0 : i32
    %c0_i32_1 = arith.constant 0 : i32
    return %c0_i32, %c0_i32_0 : i32, i32
  }
  func.func @transform_14(%arg0: i32, %arg1: i32) -> (i32, i32) {
    %c0_i32 = arith.constant 0 : i32
    %c0_i32_0 = arith.constant 0 : i32
    %c0_i32_1 = arith.constant 0 : i32
    return %c0_i32, %c0_i32_0 : i32, i32
  }
  func.func @transform_15(%arg0: i32, %arg1: i32) -> (i32, i32, i32) {
    %c0_i32 = arith.constant 0 : i32
    %c0_i32_0 = arith.constant 0 : i32
    return %arg0, %c0_i32, %arg1 : i32, i32, i32
  }
}

</mosaic_0001>

<bundles_post_ra>
// kernel: tpu_custom_call.1
= control target key start
LH: loop header
LB: loop body
LE: loop exit
PB: predicated region body
PF: predicated region fallthrough
CT: control target
= control target key end

     0   :  { %s3293_s0 = inlined_call_operand.vmem [shape: f32[2,32,256], index: 0, kind: input, shape index: {}]   ;;  %s3294_s1 = inlined_call_operand.hbm [shape: f32[2,32,128], index: 1, kind: input, shape index: {}]   ;;  %s3295_s2 = inlined_call_operand.hbm [shape: f32[1,128], index: 2, kind: input, shape index: {}]   ;;  %s3296_s3 = inlined_call_operand.vmem [shape: f32[16,32], index: 3, kind: input, shape index: {}]   ;;  %s3297_s4 = inlined_call_operand.vmem [shape: f32[16,1], index: 4, kind: input, shape index: {}]   ;;  %s3298_s5 = inlined_call_operand.vmem [shape: f32[16,16], index: 5, kind: input, shape index: {}]   ;;  %s3299_s6 = inlined_call_operand.vmem [shape: f32[16,1], index: 6, kind: input, shape index: {}]   ;;  %s3300_s7 = inlined_call_operand.vmem [shape: f32[16,32], index: 7, kind: input, shape index: {}]   ;;  %s3301_s8 = inlined_call_operand.vmem [shape: f32[16,1], index: 8, kind: input, shape index: {}]   ;;  %s3302_s9 = inlined_call_operand.hbm [shape: f32[16,16], index: 9, kind: input, shape index: {}]   ;;  %s3303_s10 = inlined_call_operand.vmem [shape: f32[16,1], index: 10, kind: input, shape index: {}]   ;;  %s3304_s11 = inlined_call_operand.hbm [shape: f32[16,32], index: 11, kind: input, shape index: {}]   ;;  %s3305_s12 = inlined_call_operand.vmem [shape: f32[16,1], index: 12, kind: input, shape index: {}]   ;;  %s3306_s13 = inlined_call_operand.vmem [shape: f32[32,16], index: 13, kind: input, shape index: {}]   ;;  %s3307_s14 = inlined_call_operand.vmem [shape: f32[32,1], index: 14, kind: input, shape index: {}]   ;;  %s3308_s15 = inlined_call_operand.hbm [shape: f32[2,32,256], index: 15, kind: output, shape index: {}]  }
   0x1   :  { %3335 = sst [smem:[#allocation27_spill]] %s3293_s0 }
   0x2   :  { %3336 = sst [smem:[#allocation28_spill]] %s3294_s1 }
   0x3   :  { %3337 = sst [smem:[#allocation29_spill]] %s3295_s2 }
   0x4   :  { %3338 = sst [smem:[#allocation30_spill]] %s3296_s3 }
   0x5   :  { %3339 = sst [smem:[#allocation31_spill]] %s3297_s4 }
   0x6   :  { %3340 = sst [smem:[#allocation32_spill]] %s3298_s5 }
   0x7   :  { %3341 = sst [smem:[#allocation33_spill]] %s3299_s6 }
   0x8   :  { %3342 = sst [smem:[#allocation34_spill]] %s3300_s7 }
   0x9   :  { %3343 = sst [smem:[#allocation35_spill]] %s3301_s8 }
   0xa   :  { %3344 = sst [smem:[#allocation36_spill]] %s3303_s10 }
   0xb   :  { %3345 = sst [smem:[#allocation37_spill]] %s3305_s12 }
   0xc   :  { %3346 = sst [smem:[#allocation38_spill]] %s3306_s13 }
   0xd   :  { %3347 = sst [smem:[#allocation39_spill]] %s3307_s14 }
   0xe   :  { %3348 = sst [smem:[#allocation40_spill]] %s3308_s15 }
   0xf   :  { %20 = vsyncpa [#allocation6], 0 }
  0x10   :  { %22 = vsyncpa [#allocation6 + $0x1], 0 }
  0x11   :  { %23 = vsyncpa [#allocation9], 0 }
  0x12   :  { %24 = vsyncpa [#allocation12], 0 }
  0x13   :  { %25 = vsyncpa [#allocation7], 0 }
  0x14   :  { %27 = vsyncpa [#allocation7 + $0x1], 0  ;;  %s2744_s18 = smov 0   ;;  %s2746_s19 = smov 0  }
  0x15   :  { %s2748_s20 = smov 0   ;;  %s2750_s21 = smov 0  }
  0x16   :  { %s2752_s22 = smov 0   ;;  %s2754_s23 = smov 0  }
  0x17   :  { %s2756_s24 = smov 0   ;;  %s2758_s25 = smov 0  }
  0x18   :  { %s2760_s26 = smov 0   ;;  %s2762_s27 = smov 0  }
  0x19   :  { %s2764_s28 = smov 0  }
  0x1a LB: > { %3349 = sst [smem:[#allocation18_spill]] %s2608_s18  ;;  %s1882_s29 = sadd.s32 4294967295, %s2648_s28   ;;  %s2648_s28 = sphi %s2764_s28, %s33_s28   ;;  %s2644_s27 = sphi %s2762_s27, %s3411_s27   ;;  %s2640_s26 = sphi %s2760_s26, %s3410_s26   ;;  %s2636_s25 = sphi %s2758_s25, %s3409_s25   ;;  %s2632_s24 = sphi %s2756_s24, %s3408_s24   ;;  %s2628_s23 = sphi %s2754_s23, %s3407_s23   ;;  %s2624_s22 = sphi %s2752_s22, %s3406_s22   ;;  %s2620_s21 = sphi %s2750_s21, %s3405_s21   ;;  %s2616_s20 = sphi %s2748_s20, %s3404_s20   ;;  %s2612_s19 = sphi %s2746_s19, %s3403_s19   ;;  %s2608_s18 = sphi %s2744_s18, %s3402_s18  }
  0x1b   : > { %3350 = sst [smem:[#allocation19_spill]] %s2632_s24  ;;  %s1883_s30 = sadd.s32 4294967294, %s2648_s28  }
  0x1c   : > { %3351 = sst [smem:[#allocation20_spill]] %s2636_s25  ;;  %s42_s16 = sadd.s32 1, %s2640_s26 }
  0x1d   : > { %s45_s17 = sadd.s32 1, %s2644_s27  ;;  %p43_p0 = scmp.ge.s32.totalorder %s42_s16, 2 }
  0x1e   : > { %s54_s15 = sadd.s32 1, %s2628_s23  ;;  %p61_p1 = scmp.ne.s32.totalorder %s2628_s23, %s2624_s22 }
  0x1f   : > { %p62_p2 = scmp.eq.s32.totalorder %s2648_s28, 0  ;;  %s3413_s16 = smov (%p43_p0, %s42_s16), 0 }
  0x20   : > { %3352 = sst [smem:[#allocation21_spill]] %s3413_s16  ;;  %s3415_s17 = smov (!%p43_p0, %s45_s17), %s2644_s27 }
  0x21   : > { %s50_s13 = ssub.s32 %s2640_s26, %s3413_s16  ;;  %p2815_p3 = por %p62_p2, %p61_p1 }
  0x22   : > { %p47_p4 = scmp.ge.s32.totalorder %s3415_s17, 2  ;;  %s80_s14 = sadd.s32 1, %s2620_s21 }
  0x23   : > { %s3353_s25 = scalar_select %p2815_p3, 1, 0 }
  0x24   : > { %p87_p5 = scmp.ne.s32.totalorder %s2620_s21, %s2616_s20  ;;  %p93_p6 = scmp.ne.s32.totalorder %s2616_s20, %s2612_s19 }
  0x25   : > { %s3417_s17 = smov (%p47_p4, %s3415_s17), 0  ;;  %p2830_p8 = scmp.eq.s32.totalorder %s1882_s29, 0 }
  0x26   : > { %3354 = sst [smem:[#allocation22_spill]] %s3417_s17  ;;  %p2826_p7 = por %p87_p5, %p62_p2 }
  0x27   : > { %s3356_s6 = scalar_select %p2830_p8, 1, 0 }
  0x28   : > { %s3355_s16 = scalar_select %p2826_p7, 1, 0 }
  0x29   : > { %s49_s5 = ssub.s32 %s2644_s27, %s3417_s17  ;;  %p392_p9 = scmp.eq.s32.totalorder %s1882_s29, 3 }
  0x2a   : > { %s51_s4 = sor.u32 %s50_s13, %s49_s5  ;;  %p78_p10 = scmp.eq.s32.totalorder %s49_s5, 0 }
  0x2b   : > { %p52_p11 = scmp.eq.s32.totalorder %s51_s4, 0  ;;  %p2838_p12 = por %p2830_p8, %p93_p6 }
  0x2c   : > { %s2843_s3 = scalar_select %p78_p10, %s2620_s21, %s80_s14  }
  0x2d   : > { %s3357_s19 = scalar_select %p2838_p12, 1, 0 }
  0x2e   : > { %3358 = sst [smem:[#allocation23_spill]] %s2843_s3  ;;  %p2851_p13 = por %p392_p9, %p61_p1 }
  0x2f   : > { %s2846_s10 = scalar_select %p52_p11, %s2628_s23, %s54_s15  }
  0x30   : > { %s3360_s12 = scalar_select %p2851_p13, 1, 0 }
  0x31   : > { %3359 = sst [smem:[#allocation24_spill]] %s2846_s10  ;;  %p397_p0 = scmp.ne.s32.totalorder %s2624_s22, %s2608_s18 }
  0x32   : > { %3361 = sst [smem:[#allocation25_spill]] %s3360_s12  ;;  %p398_p2 = scmp.eq.s32.totalorder %s1883_s30, 3 }
  0x33   : > { %p1884_p4 = scmp.ge.s32.totalorder %s2648_s28, 1  ;;  %p405_p5 = scmp.lt.s32.totalorder %s2648_s28, 5 }
  0x34   : > { %p2859_p7 = por %p398_p2, %p397_p0  ;;  %s2650_s13 = smov [#allocation8]  }
  0x35   : > { %p2863_p6 = pnand %p1884_p4, %p405_p5  ;;  %s418_s14 = sshll.u32 %s2650_s13, 4  ;;  %s419_s14 = int_to_ptr.vmem [resolvable:$true] %s418_s14 }
  0x36   : > { %s3362_s4 = scalar_select %p2859_p7, 1, 0 }
  0x37   : > { %s3364_s5 = scalar_select %p2863_p6, 1, 0 }
  0x38   : > { %3363 = sst [smem:[#allocation26_spill]] %s3362_s4  ;;  %p2216_p1 = pneg %p2863_p6 }
  0x39   : > { %s2651_s15 = smov [#allocation10]   ;;  %s2652_s17 = smov [#allocation11]  }
  0x3a   : > { %s446_s29 = sshll.u32 %s2651_s15, 4  ;;  %p2873_p9 = pnand %p2216_p1, %p2830_p8  ;;  %s2869_s29 = int_to_ptr.vmem [resolvable:$true] %s446_s29 }
  0x3b   : > { %s2877_s10 = sshll.u32 %s2652_s17, 4  ;;  %s3366_s2 = sld [smem:[#allocation29_spill]]  ;;  %s463_s10 = int_to_ptr.vmem [resolvable:$true] %s2877_s10 }
  0x3c   : > { %p2887_p11 = pneg %p2873_p9 }
  0x41   : > { %s2406_s13 = scalar_lea.hbm %s3366_s2, 16 }
  0x42   : > { %p2407_p10 = scmp.ne.s32.totalorder %s3366_s2, %s2406_s13  ;;  %p2413_p4 = scmp.lt.u32.totalorder %s2406_s13, %s3366_s2 }
  0x44   : > { %p2409_p0 = pnand %p2887_p11, %p2407_p10 }
  0x46   : > { %p2410_p2 = pneg %p2409_p0 }
  0x48   : > { %p2415_p5 = pnand %p2413_p4, %p2410_p2 }
  0x4a   : > { %2418 = shalt.err (!%p2415_p5)
}
  0x4b   : > { %s2419_s3 = scalar_lea.vmem %s419_s14, 16  ;;  %s2426_s12 = scalar_lea.vmem %s419_s14, 32 }
  0x4c   : > { %p2420_p1 = scmp.ne.s32.totalorder %s419_s14, %s2419_s3  ;;  %p2427_p8 = scmp.lt.s32.totalorder %s419_s14, %s419_s14 }
  0x4d   : > { %p2428_p12 = scmp.lt.s32.totalorder %s2426_s12, %s2419_s3 }
  0x4e   : > { %p2422_p7 = pnand %p2420_p1, %p2887_p11 }
  0x4f   : > { %p2429_p6 = por %p2428_p12, %p2427_p8 }
  0x50   : > { %p2423_p13 = pneg %p2422_p7 }
  0x52   : > { %p2430_p3 = pnand %p2429_p6, %p2423_p13 }
  0x54   : > { %2433 = shalt.err (!%p2430_p3)
}
  0x55   : > { %2219 = dma.hbm_to_vmem [thread:$0]  (!%p2873_p9), %s3366_s2, 16, %s419_s14, [#allocation9]  }
  0x56   : > { %s2434_s17 = scalar_lea.hbm %s3302_s9, 256 }
  0x57   : > { %p2435_p7 = scmp.ne.s32.totalorder %s3302_s9, %s2434_s17  ;;  %p2441_p3 = scmp.lt.u32.totalorder %s2434_s17, %s3302_s9 }
  0x59   : > { %p2437_p10 = pnand %p2435_p7, %p2887_p11 }
  0x5b   : > { %p2438_p8 = pneg %p2437_p10 }
  0x5d   : > { %p2443_p12 = pnand %p2441_p3, %p2438_p8 }
  0x5f   : > { %2446 = shalt.err (!%p2443_p12)
}
  0x60   : > { %s2447_s14 = scalar_lea.vmem %s2869_s29, 256  ;;  %p2455_p2 = scmp.lt.s32.totalorder %s2869_s29, %s2869_s29 }
  0x61   : > { %p2448_p13 = scmp.ne.s32.totalorder %s2869_s29, %s2447_s14  ;;  %p2456_p4 = scmp.lt.s32.totalorder %s2447_s14, %s2447_s14 }
  0x63   : > { %p2450_p6 = pnand %p2448_p13, %p2887_p11  ;;  %p2457_p5 = por %p2456_p4, %p2455_p2 }
  0x65   : > { %p2451_p0 = pneg %p2450_p6 }
  0x67   : > { %p2458_p1 = pnand %p2457_p5, %p2451_p0 }
  0x69   : > { %2461 = shalt.err (!%p2458_p1)
}
  0x6a   : > { %s2653_s7 = smov 128   ;;  %s2654_s24 = smov 8  }
  0x6b   : > { %2222 = dma.hbm_to_vmem [thread:$0]  (!%p2873_p9), %s3302_s9, 256, %s2869_s29, [#allocation9], %s2653_s7, %s2653_s7, %s2654_s24  }
  0x6c   : > { %s2462_s17 = scalar_lea.hbm %s3304_s11, 256 }
  0x6d   : > { %p2463_p7 = scmp.ne.s32.totalorder %s3304_s11, %s2462_s17  ;;  %p2469_p3 = scmp.lt.u32.totalorder %s2462_s17, %s3304_s11 }
  0x6f   : > { %p2465_p10 = pnand %p2463_p7, %p2887_p11 }
  0x71   : > { %p2466_p8 = pneg %p2465_p10 }
  0x73   : > { %p2471_p12 = pnand %p2469_p3, %p2466_p8 }
  0x75   : > { %2474 = shalt.err (!%p2471_p12)
}
  0x76   : > { %s2475_s18 = scalar_lea.vmem %s463_s10, 256  ;;  %p2483_p2 = scmp.lt.s32.totalorder %s463_s10, %s463_s10 }
  0x77   : > { %p2476_p13 = scmp.ne.s32.totalorder %s463_s10, %s2475_s18  ;;  %p2484_p4 = scmp.lt.s32.totalorder %s2475_s18, %s2475_s18 }
  0x79   : > { %p2478_p6 = pnand %p2476_p13, %p2887_p11  ;;  %p2485_p5 = por %p2484_p4, %p2483_p2 }
  0x7b   : > { %p2479_p0 = pneg %p2478_p6 }
  0x7d   : > { %p2486_p1 = pnand %p2485_p5, %p2479_p0 }
  0x7f   : > { %2489 = shalt.err (!%p2486_p1)
}
  0x80   : > { %2225 = dma.hbm_to_vmem [thread:$0]  (!%p2873_p9), %s3304_s11, 256, %s463_s10, [#allocation12], %s2653_s7, %s2653_s7, %s2654_s24  }
  0x81   : > { %p1888_p7 = scmp.ge.s32.totalorder %s2648_s28, 4 }
  0x82   : > { %p3368_p10 = scmp.ne.s32.totalorder (!%p1888_p7), %s3353_s25, 0 }
  0x83   : > { %481 = sbr.rel (%p1888_p7) target bundleno = 180 (0xb4), region = 68 }
  0x8a   : > { %484 = sbr.rel (!%p3368_p10) target bundleno = 150 (0x96), region = 72  ;;  %s486_s2 = sand.u32 (%p3368_p10), 1, %s2628_s23  }
  0x8b   : > { %s1890_s15 = sshll.u32 (%p3368_p10), %s2644_s27, 3  ;;  %s1889_s8 = sshll.u32 (%p3368_p10), %s486_s2, 5 }
  0x8c   : > { %s490_s13 = sadd.s32 (%p3368_p10), %s2640_s26, %s1890_s15  ;;  %s3369_s0 = sld [smem:[#allocation27_spill]] (%p3368_p10) }
  0x8d   : > { %s1891_s17 = sshll.u32 (%p3368_p10), %s490_s13, 3  ;;  %s488_s10 = scalar_lea.vmem (%p3368_p10), [#allocation4], %s1889_s8 }
  0x92   : > { %s492_s12 = scalar_lea.vmem %s3369_s0, %s1891_s17 }
  0x93   : > { %v526_v0 = vld [vmem:[%s492_s12] sm:$0xff]  ;;  %v528_v1 = vld [vmem:[%s492_s12 + $0x10] sm:$0xff] }
  0x94   : > { %v530_v2 = vld [vmem:[%s492_s12 + $0x20] sm:$0xff]  ;;  %527 = vst [vmem:[%s488_s10] sm:$0xff] %v526_v0  ;;  %529 = vst [vmem:[%s488_s10 + $0x8] sm:$0xff] %v528_v1  ;;  %v532_v3 = vld [vmem:[%s492_s12 + $0x30] sm:$0xff] }
  0x95   : > { %531 = vst [vmem:[%s488_s10 + $0x10] sm:$0xff] %v530_v2  ;;  %533 = vst [vmem:[%s488_s10 + $0x18] sm:$0xff] %v532_v3 }
  0x96 PF: > { %s540_s25 = sand.u32 1, %s2620_s21   ;;  %s1939_s7 = sshll.u32 %s2644_s27, 9 }
  0x97   : > { %s1892_s24 = sshll.u32 %s540_s25, 5  ;;  %s3370_s1 = sld [smem:[#allocation28_spill]] }
  0x98   : > { %s544_s4 = scalar_lea.vmem [#allocation5], %s1892_s24  ;;  %s2963_s15 = scalar_lea.sflag [#allocation6], %s540_s25 }
  0x99   : > { %s551_s2 = sshll.u32 %s544_s4, 4  ;;  %p3371_p11 = scmp.ne.s32.totalorder %s3355_s16, 0  ;;  %s2961_s2 = int_to_ptr.vmem [resolvable:$true] %s551_s2 }
  0x9d   : > { %s2959_s29 = scalar_lea.hbm %s3370_s1, %s1939_s7  ;;  %s2494_s3 = scalar_lea.hbm %s3370_s1, 1024 }
  0x9e   : > { %s2490_s8 = scalar_lea.hbm %s2959_s29, 512  ;;  %p2495_p12 = scmp.lt.u32.totalorder %s2959_s29, %s3370_s1 }
  0x9f   : > { %p2491_p9 = scmp.ne.s32.totalorder %s2959_s29, %s2490_s8  ;;  %p2496_p13 = scmp.lt.u32.totalorder %s2494_s3, %s2490_s8 }
  0xa0   : > { %p2498_p0 = scmp.lt.u32.totalorder %s2490_s8, %s2959_s29 }
  0xa1   : > { %p2492_p8 = pnand %p2491_p9, %p3371_p11  ;;  %p2497_p6 = por %p2496_p13, %p2495_p12 }
  0xa3   : > { %p2493_p3 = pneg %p2492_p8  ;;  %p2499_p2 = por %p2498_p0, %p2497_p6 }
  0xa5   : > { %p2500_p4 = pnand %p2499_p2, %p2493_p3 }
  0xa7   : > { %2503 = shalt.err (!%p2500_p4)
}
  0xa8   : > { %s2504_s10 = scalar_lea.vmem %s2961_s2, 512  ;;  %s2655_s25 = smov [#allocation5]  }
  0xa9   : > { %p2505_p5 = scmp.ne.s32.totalorder %s2961_s2, %s2504_s10  ;;  %s2508_s7 = sshll.u32 %s2655_s25, 4  ;;  %s2509_s7 = int_to_ptr.vmem [resolvable:$false] %s2508_s7 }
  0xaa   : > { %s2510_s24 = scalar_lea.vmem %s2509_s7, 1024  ;;  %p2511_p10 = scmp.lt.s32.totalorder %s2961_s2, %s2509_s7 }
  0xab   : > { %p2506_p1 = pnand %p2505_p5, %p3371_p11  ;;  %p2512_p9 = scmp.lt.s32.totalorder %s2510_s24, %s2504_s10 }
  0xad   : > { %p2507_p7 = pneg %p2506_p1  ;;  %p2513_p8 = por %p2512_p9, %p2511_p10 }
  0xaf   : > { %p2514_p12 = pnand %p2513_p8, %p2507_p7 }
  0xb1   : > { %2517 = shalt.err (!%p2514_p12)
}
  0xb2   : > { %s2656_s14 = smov 128   ;;  %s2657_s18 = smov 8  }
  0xb3   : > { %2206 = dma.hbm_to_vmem [thread:$0]  (%p3371_p11), %s2959_s29, 512, %s2961_s2, %s2963_s15, %s2656_s14, %s2656_s14, %s2657_s18  }
  0xb4 PF: > { %p3372_p3 = scmp.ne.s32.totalorder %s3364_s5, 0 }
  0xb5   : > { %s3332_s4 = sand.u32 (!%p3372_p3), 1, %s2624_s22   ;;  %s572_s8 = sand.u32 (!%p3372_p3), 1, %s2616_s20  }
  0xb6   : > { %563 = sbr.rel (%p3372_p3) target bundleno = 2302 (0x8fe), region = 114  ;;  %s1896_s13 = sshll.u32 (!%p3372_p3), %s3332_s4, 5 }
  0xb7   : > { %s1897_s17 = sshll.u32 (!%p3372_p3), %s572_s8, 5  ;;  %s2993_s3 = scalar_lea.vmem (!%p3372_p3), [#allocation4], %s1896_s13 }
  0xb8   : > { %s573_s30 = scalar_lea.sflag (!%p3372_p3), [#allocation6], %s572_s8  ;;  %s576_s12 = scalar_lea.vmem (!%p3372_p3), [#allocation5], %s1897_s17 }
  0xb9   : > { %p3373_p13 = scmp.ne.s32.totalorder (!%p3372_p3), %s3357_s19, 0 }
  0xbd   : > { %2591 = dma.done.wait (%p3373_p13), %s573_s30, 512  }
  0xbe   : > { %2593 = vsyncadd (%p3373_p13), %s573_s30, 4294966784  ;;  %p3374_p11 = scmp.ne.s32.totalorder %s3356_s6, 0 }
  0xc0   : > { %2595 = dma.done.wait (%p3374_p11), [#allocation9], 272  }
  0xc1   : > { %2597 = vsyncadd (%p3374_p11), [#allocation9], 4294967024 }
  0xc2   : > { %2599 = dma.done.wait (%p3374_p11), [#allocation12], 256  }
  0xc3   : > { %2601 = vsyncadd (%p3374_p11), [#allocation12], 4294967040  ;;  %s3007_s16 = scalar_lea.vmem [#allocation13], %s1896_s13  ;;  %s3375_s5 = sld [smem:[#allocation19_spill]] }
  0xc9   : > { %p1902_p6 = scmp.ne.s32.totalorder %s3375_s5, 0 }
  0xca   : > { %v643_v4 = vld [vmem:[%s576_s12] sm:$0xff] (!%p1902_p6)  ;;  %v644_v5 = vld [vmem:[%s576_s12 + $0x8] sm:$0xff] (!%p1902_p6)  ;;  %v645_v6 = vld [vmem:[%s576_s12 + $0x10] sm:$0xff] (!%p1902_p6)  ;;  %vm661_vm0 = vcmask (!%p1902_p6), 261120   ;;  %s3376_s2 = sld [smem:[#allocation34_spill]] (!%p1902_p6)  ;;  %v2658_v10 = vmov (!%p1902_p6), 0  }
  0xcb   : > { %642 = sbr.rel (%p1902_p6) target bundleno = 662 (0x296), region = 138  ;;  %v2128_v7 = vpack.c.bf16 (!%p1902_p6), %v644_v5, %v643_v4  ;;  %v646_v8 = vld [vmem:[%s576_s12 + $0x18] sm:$0xff] (!%p1902_p6)  ;;  %2338 = vset.pattern.permute.xlu0 (!%p1902_p6), %v2658_v10  ;;  %2339 = vset.pattern.permute.xlu1 (!%p1902_p6), %v2658_v10  ;;  %s3377_s10 = sld [smem:[#allocation35_spill]] (!%p1902_p6)  ;;  %v745_v16 = vld [vmem:[#allocation10] sm:$0xff] (!%p1902_p6)  ;;  %vm759_vm1 = vcmask (!%p1902_p6), 130048   ;;  %v746_v29 = vld [vmem:[#allocation10 + $0x8] sm:$0xff] (!%p1902_p6) }
  0xcc   : > { %v2132_v11 = vpack.c.bf16 (!%p1902_p6), %v646_v8, %v645_v6  ;;  %s3378_s13 = sld [smem:[#allocation37_spill]] (!%p1902_p6)  ;;  %2023 = vmatprep.mubr.msk.f32.mxu1 (!%p1902_p6), %vm759_vm1, %v745_v16  ;;  %s3379_s12 = sld [smem:[#allocation36_spill]] (!%p1902_p6)  ;;  %v843_v30 = vld [vmem:[#allocation11] sm:$0xff] (!%p1902_p6)  ;;  %v844_v31 = vld [vmem:[#allocation11 + $0x8] sm:$0xff] (!%p1902_p6) }
  0xcd   : > { %2129 = vmatprep.subr.bf16.mxu0 (!%p1902_p6), %v2128_v7 }
  0xce   : > { %2131 = vmatpush3.bf16.msra.mxu0 (!%p1902_p6), %v2128_v7 }
  0xcf   : > { %2133 = vmatprep.subr.bf16.mxu0 (!%p1902_p6), %v2132_v11 }
  0xd0   : > { %v647_v9 = vld [vmem:[%s3376_s2] sm:$0xff] (!%p1902_p6)  ;;  %v648_v14 = vld [vmem:[%s3376_s2 + $0x8] sm:$0xff] (!%p1902_p6) }
  0xd1   : > { %2016 = vmatprep.mubr.msk.f32.mxu0 (!%p1902_p6), %vm661_vm0, %v647_v9  ;;  %v649_v12 = vld [vmem:[%s3377_s10] sm:$0xff] (!%p1902_p6)  ;;  %v650_v13 = vld [vmem:[%s3377_s10 + $0x8] sm:$0xff] (!%p1902_p6) }
  0xd2   : > { %653 = vperm.xlu0 %2338, %v649_v12   ;;  %2135 = vmatpush3.bf16.msra.mxu0 %v2132_v11  ;;  %v845_v15 = vld [vmem:[%s3378_s13] sm:$0xff]  ;;  %v748_v18 = vld [vmem:[%s3379_s12 + $0x8] sm:$0xff] }
  0xd3   : > { %v747_v17 = vld [vmem:[%s3379_s12] sm:$0xff]  ;;  %v846_v19 = vld [vmem:[%s3378_s13 + $0x8] sm:$0xff] }
  0xd4   : > { %751 = vperm.xlu1 %2339, %v747_v17  }
  0xd5   : > { %2017 = vmatmul.mubr.msk.f32.vlgmr.msra.gmra.mrb[0].mxu0 %vm661_vm0, %v648_v14 }
  0xd6   : > { %658 = vperm.xlu0 %2338, %v650_v13  }
  0xd8   : > { %756 = vperm.xlu1 %2339, %v748_v18  }
  0xda   : > { %849 = vperm.xlu0 %2338, %v845_v15  }
  0xdc   : > { %854 = vperm.xlu1 %2339, %v846_v19  }
 0x151   : > { %v654_v20 = vpop.permute.xlu0 %653 }
 0x153   : > { %v752_v32 = vpop.permute.xlu1 %751 }
 0x155   : > { %v659_v21 = vpop.permute.xlu0 %658 }
 0x157   : > { %v757_v33 = vpop.permute.xlu1 %756 }
 0x159   : > { %v850_v42 = vpop.permute.xlu0 %849 }
 0x15b   : > { %v855_v40 = vpop.permute.xlu1 %854 }
 0x1a8   : > { %v2018_v22 = vpop.f32.mrb[0].mxu0 }
 0x1a9   : > { %v740_v23 = vadd.f32 %v2018_v22, %v659_v21  ;;  %v734_v24 = vpop.f32.mrb[1].mxu0 }
 0x1aa   : > { %v735_v25 = vadd.f32 %v734_v24, %v654_v20 }
 0x1ab   : > { %v744_v26 = vmax.f32 %v740_v23, 0.0 }
 0x1ac   : > { %v743_v27 = vmax.f32 %v735_v25, 0.0 }
 0x1ae   : > { %v2136_v28 = vpack.c.bf16 %v744_v26, %v743_v27 }
 0x1b0   : > { %2137 = vmatprep.subr.bf16.mxu1 %v2136_v28 }
 0x1b1   : > { %2139 = vmatpush3.bf16.msra.mxu1 %v2136_v28 }
 0x1b2   : > { %2141 = vmatprep.subr.bf16.mxu1 %v2128_v7 }
 0x1b4   : > { %2024 = vmatmul.mubr.msk.f32.vlgmr.msra.gmra.mrb[0].mxu1 %vm759_vm1, %v746_v29 }
 0x1b5   : > { %2143 = vmatpush3.bf16.msra.mxu1 %v2128_v7  ;;  %2034 = vmatprep.mubr.msk.f32.mxu1 %vm661_vm0, %v843_v30 }
 0x1b6   : > { %2145 = vmatprep.subr.bf16.mxu1 %v2132_v11 }
 0x1b9   : > { %2147 = vmatpush3.bf16.msra.mxu1 %v2132_v11 }
 0x1bc   : > { %2035 = vmatmul.mubr.msk.f32.vlgmr.msra.gmra.mrb[2].mxu1 %vm661_vm0, %v844_v31 }
 0x287   : > { %v2025_v34 = vpop.f32.mrb[0].mxu1 }
 0x288   : > { %v838_v35 = vadd.f32 %v2025_v34, %v757_v33  ;;  %v832_v36 = vpop.f32.mrb[1].mxu1 }
 0x289   : > { %v833_v37 = vadd.f32 %v832_v36, %v752_v32 }
 0x28a   : > { %v842_v38 = vmax.f32 %v838_v35, 0.0 }
 0x28b   : > { %v841_v39 = vmax.f32 %v833_v37, 0.0 }
 0x28c   : > { %941 = vst [vmem:[#allocation2 + $0x8] sm:$0xff] %v842_v38 }
 0x28d   : > { %940 = vst [vmem:[#allocation2] sm:$0xff] %v841_v39 }
 0x28f   : > { %v2036_v41 = vpop.f32.mrb[2].mxu1 }
 0x290   : > { %v935_v43 = vadd.f32 %v2036_v41, %v855_v40  ;;  %v929_v44 = vpop.f32.mrb[3].mxu1 }
 0x291   : > { %v930_v45 = vadd.f32 %v929_v44, %v850_v42 }
 0x292   : > { %v939_v46 = vmax.f32 %v935_v43, 0.0 }
 0x293   : > { %v938_v47 = vmax.f32 %v930_v45, 0.0 }
 0x294   : > { %943 = vst [vmem:[#allocation3 + $0x8] sm:$0xff] %v939_v46 }
 0x295   : > { %942 = vst [vmem:[#allocation3] sm:$0xff] %v938_v47 }
 0x296 PF: > { %v944_v48 = vld [vmem:[%s2993_s3] sm:$0xff]  ;;  %v945_v49 = vld [vmem:[%s2993_s3 + $0x8] sm:$0xff]  ;;  %v946_v50 = vld [vmem:[%s2993_s3 + $0x10] sm:$0xff]  ;;  %vm962_vm2 = vcmask 261120   ;;  %s3380_s7 = sld [smem:[#allocation30_spill]]  ;;  %v2659_v54 = vmov 0  }
 0x297   : > { %v2148_v51 = vpack.c.bf16 %v945_v49, %v944_v48  ;;  %v947_v52 = vld [vmem:[%s2993_s3 + $0x18] sm:$0xff]  ;;  %2340 = vset.pattern.permute.xlu0 %v2659_v54  ;;  %2341 = vset.pattern.permute.xlu1 %v2659_v54  ;;  %s3381_s18 = sld [smem:[#allocation31_spill]]  ;;  %s3383_s6 = sld [smem:[#allocation32_spill]]  ;;  %vm1060_vm3 = vcmask 130048   ;;  %v1176_v15 = vld [vmem:[#allocation2] sm:$0xff]  ;;  %v1177_v16 = vld [vmem:[#allocation2 + $0x8] sm:$0xff] }
 0x298   : > { %v2152_v55 = vpack.c.bf16 %v947_v52, %v946_v50  ;;  %s3384_s24 = sld [smem:[#allocation33_spill]]  ;;  %v2160_v17 = vpack.c.bf16 %v1177_v16, %v1176_v15  ;;  %v1913_v35 = vld [vmem:[#allocation8] ss:$0 sm:$0xff]  ;;  %s3386_s29 = sld [smem:[#allocation39_spill]] }
 0x299   : > { %2149 = vmatprep.subr.bf16.mxu1 %v2148_v51  ;;  %s3387_s3 = sld [smem:[#allocation20_spill]]  ;;  %s3388_s15 = sld [smem:[#allocation38_spill]] }
 0x29a   : > { %2151 = vmatpush3.bf16.msra.mxu1 %v2148_v51  ;;  %s3389_s25 = sld [smem:[#allocation19_spill]]  ;;  %s3390_s17 = sld [smem:[#allocation25_spill]] }
 0x29b   : > { %2153 = vmatprep.subr.bf16.mxu1 %v2152_v55  ;;  %s1747_s30 = sshll.u32 %s3007_s16, 4  ;;  %s3226_s30 = int_to_ptr.vmem [resolvable:$true] %s1747_s30 }
 0x29c   : > { %v948_v53 = vld [vmem:[%s3380_s7] sm:$0xff]  ;;  %v949_v58 = vld [vmem:[%s3380_s7 + $0x8] sm:$0xff]  ;;  %s2518_s1 = scalar_lea.vmem %s3226_s30, 512 }
 0x29d   : > { %2045 = vmatprep.mubr.msk.f32.mxu1 %vm962_vm2, %v948_v53  ;;  %s3382_s8 = smov %s3381_s18  ;;  %v950_v56 = vld [vmem:[%s3381_s18] sm:$0xff]  ;;  %v1047_v7 = vld [vmem:[%s3383_s6 + $0x8] sm:$0xff]  ;;  %p2519_p0 = scmp.ne.s32.totalorder %s3226_s30, %s2518_s1 }
 0x29e   : > { %954 = vperm.xlu0 %2340, %v950_v56   ;;  %v951_v57 = vld [vmem:[%s3382_s8 + $0x8] sm:$0xff]  ;;  %2155 = vmatpush3.bf16.msra.mxu1 %v2152_v55  ;;  %v1046_v59 = vld [vmem:[%s3383_s6] sm:$0xff]  ;;  %s3385_s14 = smov %s3384_s24 }
 0x29f   : > { %v1048_v60 = vld [vmem:[%s3384_s24] sm:$0xff]  ;;  %v1049_v61 = vld [vmem:[%s3385_s14 + $0x8] sm:$0xff]  ;;  %s1935_s4 = sshll.u32 %s3387_s3, 3  ;;  %s2660_s3 = smov [#allocation13]  }
 0x2a0   : > { %1052 = vperm.xlu1 %2341, %v1048_v60   ;;  %s1744_s24 = sadd.s32 %s3389_s25, %s1935_s4  ;;  %s3391_s25 = sld [smem:[#allocation40_spill]] }
 0x2a1   : > { %2046 = vmatmul.mubr.msk.f32.vlgmr.msra.gmra.mrb[0].mxu1 %vm962_vm2, %v949_v58  ;;  %s1936_s18 = sshll.u32 %s1744_s24, 7  ;;  %s3393_s24 = sand.u32 1, %s2624_s22  }
 0x2a2   : > { %959 = vperm.xlu0 %2340, %v951_v57   ;;  %2052 = vmatprep.mubr.msk.f32.mxu1 %vm1060_vm3, %v1046_v59  ;;  %s3232_s0 = scalar_lea.sflag [#allocation7], %s3393_s24  ;;  %p3394_p2 = scmp.ne.s32.totalorder %s3390_s17, 0 }
 0x2a4   : > { %1057 = vperm.xlu1 %2341, %v1049_v61   ;;  %p2520_p4 = pnand %p2519_p0, %p3394_p2 }
 0x2a6   : > { %s3392_s5 = smov %s3391_s25  ;;  %s3224_s19 = scalar_lea.hbm %s3391_s25, %s1936_s18 }
 0x2a7   : > { %p2521_p5 = pneg %p2520_p4  ;;  %s2522_s18 = sshll.u32 %s2660_s3, 4  ;;  %s2523_s18 = int_to_ptr.vmem [resolvable:$false] %s2522_s18 }
 0x2a8   : > { %s2524_s4 = scalar_lea.vmem %s2523_s18, 1024  ;;  %p2525_p1 = scmp.lt.s32.totalorder %s3226_s30, %s2523_s18 }
 0x2a9   : > { %p2526_p7 = scmp.lt.s32.totalorder %s2524_s4, %s2518_s1 }
 0x2ab   : > { %p2527_p10 = por %p2526_p7, %p2525_p1 }
 0x2ad   : > { %p2528_p9 = pnand %p2527_p10, %p2521_p5 }
 0x31d   : > { %v955_v62 = vpop.permute.xlu0 %954 }
 0x31f   : > { %v1053_v8 = vpop.permute.xlu1 %1052 }
 0x321   : > { %v960_v63 = vpop.permute.xlu0 %959 }
 0x323   : > { %v1058_v10 = vpop.permute.xlu1 %1057 }
 0x374   : > { %v2047_v0 = vpop.f32.mrb[0].mxu1 }
 0x375   : > { %v1041_v1 = vadd.f32 %v2047_v0, %v960_v63  ;;  %v1035_v2 = vpop.f32.mrb[1].mxu1 }
 0x376   : > { %v1036_v3 = vadd.f32 %v1035_v2, %v955_v62 }
 0x377   : > { %v1045_v4 = vmax.f32 %v1041_v1, 0.0 }
 0x378   : > { %v1044_v5 = vmax.f32 %v1036_v3, 0.0 }
 0x37a   : > { %v2156_v6 = vpack.c.bf16 %v1045_v4, %v1044_v5 }
 0x37c   : > { %2157 = vmatprep.subr.bf16.mxu1 %v2156_v6 }
 0x37d   : > { %2159 = vmatpush3.bf16.msra.mxu1 %v2156_v6 }
 0x37e   : > { %2161 = vmatprep.subr.bf16.mxu1 %v2160_v17 }
 0x380   : > { %2053 = vmatmul.mubr.msk.f32.vlgmr.msra.gmra.mrb[2].mxu1 %vm1060_vm3, %v1047_v7 }
 0x381   : > { %2163 = vmatpush3.bf16.msra.mxu1 %v2160_v17 }
 0x453   : > { %v2054_v9 = vpop.f32.mrb[2].mxu1 }
 0x454   : > { %v1133_v11 = vpop.f32.mrb[3].mxu1  ;;  %v1139_v13 = vadd.f32 %v2054_v9, %v1058_v10 }
 0x455   : > { %v1134_v12 = vadd.f32 %v1133_v11, %v1053_v8 }
 0x456   : > { %v1143_v18 = vmax.f32 %v1139_v13, 0.0 }
 0x457   : > { %v1142_v14 = vmax.f32 %v1134_v12, 0.0 }
 0x459   : > { %1144 = vxpose.xlu0.b32.start [1/2] (short) %v1142_v14, 128 }
 0x45d   : > { %1145 = vxpose.xlu0.b32.end [2/2] (short) %v1143_v18, 128 }
 0x4d9   : > { %v1160_v19 = vpop.trf.xlu0 }
 0x4da   : > { %2059 = vmatprep.mubr.msk.f32.mxu1 %vm1060_vm3, %v1160_v19 }
 0x4dd   : > { %v1161_v20 = vpop.trf.xlu0 }
 0x4de   : > { %2060 = vmatmul.mubr.msk.f32.vlgmr.msra.gmra.mrb[4].mxu1 %vm1060_vm3, %v1161_v20 }
 0x4e1   : > { %v1162_v21 = vpop.trf.xlu0 }
 0x4e2   : > { %2062 = vmatprep.mubr.msk.f32.mxu1 %vm1060_vm3, %v1162_v21 }
 0x4e5   : > { %v1163_v22 = vpop.trf.xlu0 }
 0x4e6   : > { %2063 = vmatmul.mubr.msk.f32.gmra.mrb[6].mxu1 %vm1060_vm3, %v1163_v22 }
 0x4e9   : > { %v1164_v23 = vpop.trf.xlu0 }
 0x4ea   : > { %2065 = vmatprep.mubr.msk.f32.mxu1 %vm1060_vm3, %v1164_v23 }
 0x4ed   : > { %v1165_v24 = vpop.trf.xlu0 }
 0x4ee   : > { %2066 = vmatmul.mubr.msk.f32.gmra.mrb[8].mxu1 %vm1060_vm3, %v1165_v24 }
 0x4f1   : > { %v1166_v25 = vpop.trf.xlu0 }
 0x4f2   : > { %2068 = vmatprep.mubr.msk.f32.mxu1 %vm1060_vm3, %v1166_v25 }
 0x4f5   : > { %v1167_v26 = vpop.trf.xlu0 }
 0x4f6   : > { %2069 = vmatmul.mubr.msk.f32.gmra.mrb[10].mxu1 %vm1060_vm3, %v1167_v26 }
 0x4f9   : > { %v1168_v27 = vpop.trf.xlu0 }
 0x4fa   : > { %2071 = vmatprep.mubr.msk.f32.mxu1 %vm1060_vm3, %v1168_v27 }
 0x4fd   : > { %v1169_v28 = vpop.trf.xlu0 }
 0x4fe   : > { %2072 = vmatmul.mubr.msk.f32.gmra.mrb[12].mxu1 %vm1060_vm3, %v1169_v28 }
 0x501   : > { %v1170_v29 = vpop.trf.xlu0 }
 0x502   : > { %2074 = vmatprep.mubr.msk.f32.mxu1 %vm1060_vm3, %v1170_v29 }
 0x505   : > { %v1171_v30 = vpop.trf.xlu0 }
 0x506   : > { %2075 = vmatmul.mubr.msk.f32.gmra.mrb[14].mxu1 %vm1060_vm3, %v1171_v30 }
 0x509   : > { %v1172_v31 = vpop.trf.xlu0 }
 0x50a   : > { %2077 = vmatprep.mubr.msk.f32.mxu1 %vm1060_vm3, %v1172_v31 }
 0x50d   : > { %v1173_v32 = vpop.trf.xlu0 }
 0x50e   : > { %2078 = vmatmul.mubr.msk.f32.gmra.mrb[16].mxu1 %vm1060_vm3, %v1173_v32 }
 0x511   : > { %v1174_v33 = vpop.trf.xlu0 }
 0x512   : > { %2080 = vmatprep.mubr.msk.f32.mxu1 %vm1060_vm3, %v1174_v33 }
 0x515   : > { %v1175_v34 = vpop.trf.xlu0 }
 0x516   : > { %2081 = vmatmul.mubr.msk.f32.gmra.mrb[18].mxu1 %vm1060_vm3, %v1175_v34 }
 0x5b1   : > { %v2061_v36 = vpop.f32.mrb[4].mxu1 }
 0x5b2   : > { %v1305_v37 = vadd.f32 %v2061_v36, %v1913_v35  ;;  %v1299_v38 = vpop.f32.mrb[5].mxu1 }
 0x5b3   : > { %v1300_v39 = vadd.f32 %v1913_v35, %v1299_v38 }
 0x5b4   : > { %1380 = vmax.xlane.f32.xlu0 %v1305_v37 }
 0x5b5   : > { %1378 = vmax.xlane.f32.xlu1 %v1300_v39 }
 0x5b9   : > { %v2064_v40 = vpop.f32.mrb[6].mxu1 }
 0x5ba   : > { %v1315_v41 = vadd.f32 %v2064_v40, %v1913_v35  ;;  %v1309_v42 = vpop.f32.mrb[7].mxu1 }
 0x5bb   : > { %v1310_v43 = vadd.f32 %v1913_v35, %v1309_v42 }
 0x5bc   : > { %1384 = vmax.xlane.f32.xlu1 %v1315_v41 }
 0x5c0   : > { %1382 = vmax.xlane.f32.xlu1 %v1310_v43 }
 0x5c1   : > { %v2067_v44 = vpop.f32.mrb[8].mxu1 }
 0x5c2   : > { %v1325_v45 = vadd.f32 %v2067_v44, %v1913_v35  ;;  %v1319_v46 = vpop.f32.mrb[9].mxu1 }
 0x5c3   : > { %v1320_v47 = vadd.f32 %v1913_v35, %v1319_v46 }
 0x5c4   : > { %1388 = vmax.xlane.f32.xlu1 %v1325_v45 }
 0x5c8   : > { %1386 = vmax.xlane.f32.xlu1 %v1320_v47 }
 0x5c9   : > { %v2070_v48 = vpop.f32.mrb[10].mxu1 }
 0x5ca   : > { %v1335_v49 = vadd.f32 %v2070_v48, %v1913_v35  ;;  %v1329_v50 = vpop.f32.mrb[11].mxu1 }
 0x5cb   : > { %v3088_v51 = vadd.f32 %v1913_v35, %v1329_v50 }
 0x5cc   : > { %1392 = vmax.xlane.f32.xlu1 %v1335_v49 }
 0x5d0   : > { %1390 = vmax.xlane.f32.xlu1 %v3088_v51 }
 0x5d1   : > { %v2073_v52 = vpop.f32.mrb[12].mxu1 }
 0x5d2   : > { %v3091_v53 = vadd.f32 %v2073_v52, %v1913_v35  ;;  %v1339_v54 = vpop.f32.mrb[13].mxu1 }
 0x5d3   : > { %v3094_v55 = vadd.f32 %v1913_v35, %v1339_v54 }
 0x5d4   : > { %1396 = vmax.xlane.f32.xlu1 %v3091_v53 }
 0x5d8   : > { %1394 = vmax.xlane.f32.xlu1 %v3094_v55 }
 0x5d9   : > { %v2076_v56 = vpop.f32.mrb[14].mxu1 }
 0x5da   : > { %v3097_v57 = vadd.f32 %v2076_v56, %v1913_v35  ;;  %v1349_v58 = vpop.f32.mrb[15].mxu1 }
 0x5db   : > { %v3100_v59 = vadd.f32 %v1913_v35, %v1349_v58 }
 0x5dc   : > { %1400 = vmax.xlane.f32.xlu1 %v3097_v57 }
 0x5e0   : > { %1398 = vmax.xlane.f32.xlu1 %v3100_v59 }
 0x5e1   : > { %v2079_v60 = vpop.f32.mrb[16].mxu1 }
 0x5e2   : > { %v3103_v61 = vadd.f32 %v2079_v60, %v1913_v35  ;;  %v1359_v62 = vpop.f32.mrb[17].mxu1 }
 0x5e3   : > { %v3106_v63 = vadd.f32 %v1913_v35, %v1359_v62 }
 0x5e4   : > { %1404 = vmax.xlane.f32.xlu1 %v3103_v61 }
 0x5e8   : > { %1402 = vmax.xlane.f32.xlu1 %v3106_v63 }
 0x5e9   : > { %v2082_v0 = vpop.f32.mrb[18].mxu1 }
 0x5ea   : > { %v1369_v1 = vpop.f32.mrb[19].mxu1  ;;  %v3112_v3 = vadd.f32 %v2082_v0, %v1913_v35 }
 0x5eb   : > { %v3109_v2 = vadd.f32 %v1913_v35, %v1369_v1 }
 0x5ed   : > { %1406 = vmax.xlane.f32.xlu1 %v3109_v2 }
 0x5f1   : > { %1408 = vmax.xlane.f32.xlu1 %v3112_v3 }
 0x641   : > { %v1381_v4 = vpop.xlane.xlu0 %1380 }
 0x642   : > { %v1411_v5 = vsub.f32 %v1305_v37, %v1381_v4  ;;  %v1379_v6 = vpop.xlane.xlu1 %1378 }
 0x643   : > { %v1410_v7 = vsub.f32 %v1300_v39, %v1379_v6  ;;  %v1606_v6 = vld [vmem:[%s3386_s29 + $0x18] sm:$0xff] }
 0x644   : > { %v1428_v8 = vmul.f32 1.442695, %v1411_v5  ;;  %v1605_v5 = vld [vmem:[%s3386_s29 + $0x10] sm:$0xff] }
 0x645   : > { %v1426_v9 = vmul.f32 1.442695, %v1410_v7  ;;  %v1604_v7 = vld [vmem:[%s3386_s29 + $0x8] sm:$0xff] }
 0x646   : > { %2342 = vpow2.f32 %v1428_v8  ;;  %v1522_v8 = vld [vmem:[#allocation3] sm:$0xff] }
 0x647   : > { %2344 = vpow2.f32 %v1426_v9  ;;  %2115 = vmatprep.mubr.f32.mxu0 %v1522_v8  ;;  %v1602_v8 = vld [vmem:[%s3388_s15 + $0x18] sm:$0xff] }
 0x649   : > { %v1385_v10 = vpop.xlane.xlu1 %1384 }
 0x64a   : > { %v1413_v11 = vsub.f32 %v1315_v41, %v1385_v10 }
 0x64c   : > { %v1432_v12 = vmul.f32 1.442695, %v1413_v11 }
 0x64d   : > { %v1383_v13 = vpop.xlane.xlu1 %1382 }
 0x64e   : > { %2346 = vpow2.f32 %v1432_v12  ;;  %v1412_v14 = vsub.f32 %v1310_v43, %v1383_v13 }
 0x650   : > { %v3115_v15 = vpop.eup %2342  ;;  %v1430_v16 = vmul.f32 1.442695, %v1412_v14 }
 0x651   : > { %v1389_v17 = vpop.xlane.xlu1 %1388  ;;  %1460 = vadd.xlane.f32.xlu1 %v3115_v15  ;;  %v3118_v19 = vpop.eup %2344 }
 0x652   : > { %2348 = vpow2.f32 %v1430_v16  ;;  %v1415_v18 = vsub.f32 %v1325_v45, %v1389_v17 }
 0x654   : > { %v1436_v20 = vmul.f32 1.442695, %v1415_v18 }
 0x655   : > { %v1387_v21 = vpop.xlane.xlu1 %1386  ;;  %1458 = vadd.xlane.f32.xlu1 %v3118_v19 }
 0x656   : > { %2350 = vpow2.f32 %v1436_v20  ;;  %v1414_v22 = vsub.f32 %v1320_v47, %v1387_v21 }
 0x658   : > { %v3121_v23 = vpop.eup %2346  ;;  %v1434_v24 = vmul.f32 1.442695, %v1414_v22 }
 0x659   : > { %v1393_v25 = vpop.xlane.xlu1 %1392  ;;  %1464 = vadd.xlane.f32.xlu1 %v3121_v23 }
 0x65a   : > { %2352 = vpow2.f32 %v1434_v24  ;;  %v1417_v26 = vsub.f32 %v1335_v49, %v1393_v25 }
 0x65c   : > { %v3124_v27 = vpop.eup %2348  ;;  %v1440_v28 = vmul.f32 1.442695, %v1417_v26 }
 0x65d   : > { %v1391_v29 = vpop.xlane.xlu1 %1390  ;;  %1462 = vadd.xlane.f32.xlu1 %v3124_v27 }
 0x65e   : > { %2354 = vpow2.f32 %v1440_v28  ;;  %v1416_v30 = vsub.f32 %v3088_v51, %v1391_v29 }
 0x660   : > { %v3128_v31 = vpop.eup %2350  ;;  %v1438_v32 = vmul.f32 1.442695, %v1416_v30 }
 0x661   : > { %v1397_v33 = vpop.xlane.xlu1 %1396  ;;  %1468 = vadd.xlane.f32.xlu1 %v3128_v31 }
 0x662   : > { %2356 = vpow2.f32 %v1438_v32  ;;  %v1419_v35 = vsub.f32 %v3091_v53, %v1397_v33 }
 0x664   : > { %v3131_v34 = vpop.eup %2352  ;;  %v1444_v40 = vmul.f32 1.442695, %v1419_v35 }
 0x665   : > { %v1395_v36 = vpop.xlane.xlu1 %1394  ;;  %1466 = vadd.xlane.f32.xlu1 %v3131_v34 }
 0x666   : > { %v1418_v37 = vsub.f32 %v3094_v55, %v1395_v36 }
 0x668   : > { %v3136_v38 = vpop.eup %2354  ;;  %v1442_v39 = vmul.f32 1.442695, %v1418_v37 }
 0x669   : > { %v1401_v41 = vpop.xlane.xlu1 %1400  ;;  %1472 = vadd.xlane.f32.xlu1 %v3136_v38 }
 0x66a   : > { %2358 = vpow2.f32 %v1442_v39  ;;  %v1421_v42 = vsub.f32 %v3097_v57, %v1401_v41 }
 0x66b   : > { %2360 = vpow2.f32 %v1444_v40 }
 0x66c   : > { %v3140_v43 = vpop.eup %2356  ;;  %v1448_v44 = vmul.f32 1.442695, %v1421_v42 }
 0x66d   : > { %v1399_v45 = vpop.xlane.xlu1 %1398  ;;  %1470 = vadd.xlane.f32.xlu1 %v3140_v43 }
 0x66e   : > { %2362 = vpow2.f32 %v1448_v44  ;;  %v1420_v46 = vsub.f32 %v3100_v59, %v1399_v45 }
 0x670   : > { %v1446_v47 = vmul.f32 1.442695, %v1420_v46 }
 0x671   : > { %v1405_v48 = vpop.xlane.xlu1 %1404 }
 0x672   : > { %2364 = vpow2.f32 %v1446_v47  ;;  %v1423_v49 = vsub.f32 %v3103_v61, %v1405_v48 }
 0x674   : > { %v3145_v50 = vpop.eup %2358  ;;  %v1452_v51 = vmul.f32 1.442695, %v1423_v49 }
 0x675   : > { %v1403_v52 = vpop.xlane.xlu1 %1402  ;;  %1474 = vadd.xlane.f32.xlu1 %v3145_v50  ;;  %v3149_v54 = vpop.eup %2360 }
 0x676   : > { %2366 = vpow2.f32 %v1452_v51  ;;  %v1422_v53 = vsub.f32 %v3106_v63, %v1403_v52 }
 0x678   : > { %v3151_v55 = vpop.eup %2362  ;;  %v1450_v56 = vmul.f32 1.442695, %v1422_v53 }
 0x679   : > { %1480 = vadd.xlane.f32.xlu0 %v3151_v55  ;;  %1476 = vadd.xlane.f32.xlu1 %v3149_v54 }
 0x67a   : > { %2368 = vpow2.f32 %v1450_v56  ;;  %v1407_v57 = vpop.xlane.xlu1 %1406 }
 0x67b   : > { %v1424_v58 = vsub.f32 %v3109_v2, %v1407_v57 }
 0x67c   : > { %v3156_v59 = vpop.eup %2364 }
 0x67d   : > { %v1454_v60 = vmul.f32 1.442695, %v1424_v58  ;;  %1478 = vadd.xlane.f32.xlu1 %v3156_v59 }
 0x67e   : > { %v1409_v61 = vpop.xlane.xlu1 %1408 }
 0x67f   : > { %2370 = vpow2.f32 %v1454_v60  ;;  %v1425_v62 = vsub.f32 %v3112_v3, %v1409_v61  ;;  %v1603_v3 = vld [vmem:[%s3386_s29] sm:$0xff] }
 0x680   : > { %v3160_v63 = vpop.eup %2366 }
 0x681   : > { %v1456_v0 = vmul.f32 1.442695, %v1425_v62  ;;  %1484 = vadd.xlane.f32.xlu0 %v3160_v63 }
 0x683   : > { %2372 = vpow2.f32 %v1456_v0 }
 0x684   : > { %v3163_v1 = vpop.eup %2368 }
 0x685   : > { %1482 = vadd.xlane.f32.xlu1 %v3163_v1 }
 0x689   : > { %v3166_v2 = vpop.eup %2370 }
 0x68a   : > { %1486 = vadd.xlane.f32.xlu1 %v3166_v2 }
 0x68d   : > { %v3169_v4 = vpop.eup %2372 }
 0x68e   : > { %1488 = vadd.xlane.f32.xlu0 %v3169_v4 }
 0x69b   : > { %1609 = vperm.xlu1 %2341, %v1603_v3  }
 0x69f   : > { %1619 = vperm.xlu1 %2341, %v1605_v5   ;;  %v1523_v5 = vld [vmem:[#allocation3 + $0x8] sm:$0xff] }
 0x6a3   : > { %1624 = vperm.xlu1 %2341, %v1606_v6  }
 0x6a4   : > { %1614 = vperm.xlu0 %2340, %v1604_v7  }
 0x6de   : > { %v1461_v9 = vpop.xlane.xlu1 %1460 }
 0x6df   : > { %2374 = vrcp.f32 %v1461_v9 }
 0x6e2   : > { %v1459_v10 = vpop.xlane.xlu1 %1458 }
 0x6e3   : > { %2376 = vrcp.f32 %v1459_v10 }
 0x6e6   : > { %v1465_v11 = vpop.xlane.xlu1 %1464 }
 0x6e7   : > { %2378 = vrcp.f32 %v1465_v11 }
 0x6e9   : > { %v2375_v13 = vpop.eup %2374 }
 0x6ea   : > { %v1463_v12 = vpop.xlane.xlu1 %1462  ;;  %v1507_v18 = vmul.f32 %v2375_v13, %v3115_v15 }
 0x6eb   : > { %2380 = vrcp.f32 %v1463_v12 }
 0x6ed   : > { %v2377_v14 = vpop.eup %2376 }
 0x6ee   : > { %v1469_v16 = vpop.xlane.xlu1 %1468  ;;  %v1506_v17 = vmul.f32 %v2377_v14, %v3118_v19 }
 0x6ef   : > { %2382 = vrcp.f32 %v1469_v16 }
 0x6f0   : > { %v2164_v20 = vpack.c.bf16 %v1507_v18, %v1506_v17 }
 0x6f1   : > { %v2379_v22 = vpop.eup %2378 }
 0x6f2   : > { %2165 = vmatprep.subr.bf16.mxu0 %v2164_v20  ;;  %v1467_v21 = vpop.xlane.xlu1 %1466  ;;  %v1509_v28 = vmul.f32 %v2379_v22, %v3121_v23 }
 0x6f3   : > { %2384 = vrcp.f32 %v1467_v21  ;;  %2167 = vmatpush3.bf16.xpose.msra.mxu0 %v2164_v20 }
 0x6f5   : > { %v2381_v24 = vpop.eup %2380 }
 0x6f6   : > { %v1473_v25 = vpop.xlane.xlu1 %1472  ;;  %v1508_v26 = vmul.f32 %v2381_v24, %v3124_v27 }
 0x6f7   : > { %2386 = vrcp.f32 %v1473_v25 }
 0x6f8   : > { %v2168_v29 = vpack.c.bf16 %v1509_v28, %v1508_v26 }
 0x6f9   : > { %v2383_v19 = vpop.eup %2382 }
 0x6fa   : > { %2169 = vmatprep.subr.bf16.mxu0 %v2168_v29  ;;  %v1471_v30 = vpop.xlane.xlu1 %1470  ;;  %v1511_v33 = vmul.f32 %v2383_v19, %v3128_v31 }
 0x6fb   : > { %2388 = vrcp.f32 %v1471_v30  ;;  %2171 = vmatpush3.bf16.xpose.msra.mxu0 %v2168_v29 }
 0x6fd   : > { %v2385_v15 = vpop.eup %2384 }
 0x6fe   : > { %v1510_v32 = vmul.f32 %v2385_v15, %v3131_v34 }
 0x700   : > { %v2172_v35 = vpack.c.bf16 %v1511_v33, %v1510_v32 }
 0x701   : > { %v2387_v37 = vpop.eup %2386 }
 0x702   : > { %2173 = vmatprep.subr.bf16.mxu0 %v2172_v35  ;;  %v1475_v36 = vpop.xlane.xlu1 %1474  ;;  %v1513_v41 = vmul.f32 %v2387_v37, %v3136_v38 }
 0x703   : > { %2175 = vmatpush3.bf16.xpose.msra.mxu0 %v2172_v35  ;;  %2390 = vrcp.f32 %v1475_v36 }
 0x705   : > { %v2389_v27 = vpop.eup %2388 }
 0x706   : > { %v1477_v23 = vpop.xlane.xlu1 %1476  ;;  %v1481_v39 = vpop.xlane.xlu0 %1480  ;;  %v1512_v40 = vmul.f32 %v2389_v27, %v3140_v43 }
 0x707   : > { %2392 = vrcp.f32 %v1477_v23 }
 0x708   : > { %v2176_v42 = vpack.c.bf16 %v1513_v41, %v1512_v40  ;;  %2394 = vrcp.f32 %v1481_v39 }
 0x70a   : > { %2177 = vmatprep.subr.bf16.mxu0 %v2176_v42  ;;  %v1479_v34 = vpop.xlane.xlu1 %1478 }
 0x70b   : > { %2396 = vrcp.f32 %v1479_v34  ;;  %2179 = vmatpush3.bf16.xpose.msra.mxu0 %v2176_v42 }
 0x70d   : > { %v2391_v44 = vpop.eup %2390 }
 0x70e   : > { %v1485_v31 = vpop.xlane.xlu0 %1484  ;;  %v1514_v47 = vmul.f32 %v2391_v44, %v3145_v50 }
 0x70f   : > { %2398 = vrcp.f32 %v1485_v31 }
 0x711   : > { %v2393_v45 = vpop.eup %2392 }
 0x712   : > { %v1483_v46 = vpop.xlane.xlu1 %1482  ;;  %v1515_v48 = vmul.f32 %v2393_v45, %v3149_v54  ;;  %v2395_v49 = vpop.eup %2394 }
 0x713   : > { %2400 = vrcp.f32 %v1483_v46  ;;  %v1517_v52 = vmul.f32 %v2395_v49, %v3151_v55 }
 0x714   : > { %v2180_v43 = vpack.c.bf16 %v1515_v48, %v1514_v47 }
 0x715   : > { %v2397_v38 = vpop.eup %2396 }
 0x716   : > { %2181 = vmatprep.subr.bf16.mxu0 %v2180_v43  ;;  %v1516_v51 = vmul.f32 %v2397_v38, %v3156_v59 }
 0x717   : > { %2183 = vmatpush3.bf16.xpose.msra.mxu0 %v2180_v43  ;;  %v1487_v53 = vpop.xlane.xlu1 %1486 }
 0x718   : > { %v2184_v56 = vpack.c.bf16 %v1517_v52, %v1516_v51  ;;  %2402 = vrcp.f32 %v1487_v53 }
 0x719   : > { %v2399_v57 = vpop.eup %2398 }
 0x71a   : > { %2185 = vmatprep.subr.bf16.mxu0 %v2184_v56  ;;  %v1519_v60 = vmul.f32 %v2399_v57, %v3160_v63  ;;  %v1599_v63 = vld [vmem:[%s3388_s15] sm:$0xff] }
 0x71b   : > { %v1489_v58 = vpop.xlane.xlu0 %1488  ;;  %2122 = vmatprep.mubr.msk.f32.mxu1 %vm1060_vm3, %v1599_v63  ;;  %v1610_v9 = vpop.permute.xlu1 %1609 }
 0x71c   : > { %2404 = vrcp.f32 %v1489_v58 }
 0x71d   : > { %v2401_v50 = vpop.eup %2400 }
 0x71e   : > { %v1518_v54 = vmul.f32 %v2401_v50, %v3163_v1 }
 0x71f   : > { %2187 = vmatpush3.bf16.xpose.msra.mxu0 %v2184_v56  ;;  %v1620_v10 = vpop.permute.xlu1 %1619 }
 0x720   : > { %v2188_v61 = vpack.c.bf16 %v1519_v60, %v1518_v54 }
 0x722   : > { %2189 = vmatprep.subr.bf16.mxu0 %v2188_v61  ;;  %v2403_v62 = vpop.eup %2402 }
 0x723   : > { %v1520_v55 = vmul.f32 %v2403_v62, %v3166_v2  ;;  %v1600_v2 = vld [vmem:[%s3388_s15 + $0x8] sm:$0xff]  ;;  %v1615_v11 = vpop.permute.xlu0 %1614  ;;  %v1625_v18 = vpop.permute.xlu1 %1624 }
 0x726   : > { %v2405_v59 = vpop.eup %2404 }
 0x727   : > { %2191 = vmatpush3.bf16.xpose.msra.mxu0 %v2188_v61  ;;  %v1521_v0 = vmul.f32 %v2405_v59, %v3169_v4  ;;  %v1601_v4 = vld [vmem:[%s3388_s15 + $0x10] sm:$0xff] }
 0x729   : > { %v2192_v3 = vpack.c.bf16 %v1521_v0, %v1520_v55 }
 0x72b   : > { %2193 = vmatprep.subr.bf16.mxu0 %v2192_v3 }
 0x72f   : > { %2195 = vmatpush3.bf16.xpose.msra.mxu0 %v2192_v3 }
 0x736   : > { %2116 = vmatmul.mubr.f32.vlgmr.msra.gmra.mrb[0].mxu0 %v1523_v5 }
 0x809   : > { %v2117_v1 = vpop.f32.mrb[0].mxu0 }
 0x80a   : > { %v1590_v6 = vpop.f32.mrb[1].mxu0 }
 0x80b   : > { %v2196_v7 = vpack.c.bf16 %v2117_v1, %v1590_v6 }
 0x80d   : > { %2197 = vmatprep.subr.bf16.mxu1 %v2196_v7 }
 0x80e   : > { %2199 = vmatpush3.bf16.msra.mxu1 %v2196_v7 }
 0x811   : > { %2123 = vmatmul.mubr.msk.f32.vlgmr.msra.gmra.mrb[20].mxu1 %vm1060_vm3, %v1600_v2 }
 0x812   : > { %2125 = vmatprep.mubr.msk.f32.mxu1 %vm1060_vm3, %v1601_v4 }
 0x815   : > { %2126 = vmatmul.mubr.msk.f32.gmra.mrb[22].mxu1 %vm1060_vm3, %v1602_v8 }
 0x8e4   : > { %v2124_v12 = vpop.f32.mrb[20].mxu1 }
 0x8e5   : > { %v1711_v13 = vadd.f32 %v2124_v12, %v1615_v11  ;;  %v1705_v14 = vpop.f32.mrb[21].mxu1 }
 0x8e6   : > { %v1706_v16 = vadd.f32 %v1705_v14, %v1610_v9 }
 0x8e7   : > { %v1725_v17 = vmax.f32 %v1711_v13, 0.0 }
 0x8e8   : > { %v1724_v20 = vmax.f32 %v1706_v16, 0.0  ;;  %v2127_v21 = vpop.f32.mrb[22].mxu1 }
 0x8e9   : > { %1729 = vst [vmem:[%s3007_s16 + $0x8] sm:$0xff] %v1725_v17  ;;  %v1721_v22 = vadd.f32 %v2127_v21, %v1625_v18  ;;  %v1715_v24 = vpop.f32.mrb[23].mxu1 }
 0x8ea   : > { %1728 = vst [vmem:[%s3007_s16] sm:$0xff] %v1724_v20  ;;  %v1716_v25 = vadd.f32 %v1715_v24, %v1620_v10 }
 0x8eb   : > { %v1727_v26 = vmax.f32 %v1721_v22, 0.0 }
 0x8ec   : > { %v1726_v28 = vmax.f32 %v1716_v25, 0.0 }
 0x8ed   : > { %1731 = vst [vmem:[%s3007_s16 + $0x18] sm:$0xff] %v1727_v26 }
 0x8ee   : > { %1730 = vst [vmem:[%s3007_s16 + $0x10] sm:$0xff] %v1726_v28 }
 0x8ef   : > { %2531 = shalt.err (!%p2528_p9)
}
 0x8f0   : > { %s2532_s16 = scalar_lea.hbm %s3224_s19, 512  ;;  %s2536_s3 = scalar_lea.hbm %s3392_s5, 2048 }
 0x8f1   : > { %p2533_p8 = scmp.ne.s32.totalorder %s3224_s19, %s2532_s16  ;;  %p2537_p13 = scmp.lt.u32.totalorder %s3224_s19, %s3392_s5 }
 0x8f2   : > { %p2538_p11 = scmp.lt.u32.totalorder %s2536_s3, %s2532_s16  ;;  %p2540_p0 = scmp.lt.u32.totalorder %s2532_s16, %s3224_s19 }
 0x8f3   : > { %p2534_p12 = pnand %p2533_p8, %p3394_p2 }
 0x8f4   : > { %p2539_p6 = por %p2538_p11, %p2537_p13 }
 0x8f5   : > { %p2535_p3 = pneg %p2534_p12 }
 0x8f6   : > { %p2541_p4 = por %p2540_p0, %p2539_p6 }
 0x8f8   : > { %p2542_p5 = pnand %p2541_p4, %p2535_p3 }
 0x8fa   : > { %2545 = shalt.err (!%p2542_p5)
}
 0x8fb   : > { %s2661_s1 = smov 128   ;;  %s2662_s4 = smov 256  }
 0x8fc   : > { %s2663_s6 = smov 8  }
 0x8fd   : > { %2214 = dma.vmem_to_hbm [thread:$0]  (%p3394_p2), %s3226_s30, 512, %s3224_s19, %s3232_s0, %s2661_s1, %s2662_s4, %s2663_s6  }
 0x8fe PF: > { %s3395_s25 = sld [smem:[#allocation18_spill]]  ;;  %s3396_s2 = sld [smem:[#allocation26_spill]] }
 0x8ff   : > { %p2236_p1 = scmp.ge.s32.totalorder %s2648_s28, 2 }
 0x904   : > { %s1762_s24 = sand.u32 1, %s3395_s25   ;;  %p3397_p7 = scmp.ne.s32.totalorder %s3396_s2, 0 }
 0x905   : > { %s1763_s16 = scalar_lea.sflag [#allocation7], %s1762_s24 }
 0x906   : > { %p2227_p10 = pnand %p2236_p1, %p3397_p7 }
 0x908   : > { %2603 = dma.done.wait (!%p2227_p10), %s1763_s16, 512  }
 0x909   : > { %2605 = vsyncadd (!%p2227_p10), %s1763_s16, 4294966784  ;;  %s33_s28 = sadd.s32 1, %s2648_s28   ;;  %s3398_s3 = sld [smem:[#allocation23_spill]] }
 0x90a   : > { %p30_p9 = scmp.ge.s32.totalorder %s33_s28, 6   ;;  %s3399_s0 = sld [smem:[#allocation24_spill]] }
 0x90b   : > { %s3400_s6 = sld [smem:[#allocation21_spill]]  ;;  %s3401_s17 = sld [smem:[#allocation22_spill]] }
 0x90c   : > { %s3402_s18 = smov %s2624_s22  ;;  %s3403_s19 = smov %s2616_s20 }
 0x90d   : > { %s3404_s20 = smov %s2620_s21  ;;  %s3406_s22 = smov %s2628_s23 }
 0x90e   : > { %s3408_s24 = smov %s2640_s26  ;;  %s3409_s25 = smov %s2644_s27 }
 0x90f   : > { %s3405_s21 = smov %s3398_s3  ;;  %32 = sbr.rel (!%p30_p9) target bundleno = 26 (0x1a), region = 187 }
 0x910   : > { %s3407_s23 = smov %s3399_s0 }
 0x911   : > { %s3410_s26 = smov %s3400_s6  ;;  %s3411_s27 = smov %s3401_s17 }
 0x916   :  { %1768 = vsyncpa [#allocation6], 1 }
 0x917   :  { %1770 = vsyncpa [#allocation6 + $0x1], 1 }
 0x918   :  { %1771 = vsyncpa [#allocation9], 1 }
 0x919   :  { %1772 = vsyncpa [#allocation12], 1 }
 0x91a   :  { %1773 = vsyncpa [#allocation7], 1 }
 0x91b   :  { %1775 = vsyncpa [#allocation7 + $0x1], 1 }

</bundles_post_ra>
